<compile_context>
chip_gen: v7x
topology: tpu7x:2x2x1
jax: 0.10.0
libtpu: 0.0.40
codegen_flags: <defaults>
</compile_context>

<pallas_src>
import jax
import jax.numpy as jnp
from jax.experimental import pallas as pl
from jax.experimental.pallas import tpu as pltpu

BN_EPS = 1e-5
LANE = 128


# ---------------------------------------------------------------------------
# Host-side helpers: BN folding + lane padding
# ---------------------------------------------------------------------------
def fold_bn(w, b, gamma, beta, mean, var, eps=BN_EPS):
    """Fold eval-mode BatchNorm1d into the GraphConv weight/bias."""
    s = gamma * jax.lax.rsqrt(var + eps)            # [1, Dout]
    return w * s, (b - mean) * s + beta             # W' [Din, Dout], b' [1, Dout]


def pad_last(x, to=LANE):
    pad = (-x.shape[-1]) % to
    if pad:
        x = jnp.pad(x, [(0, 0)] * (x.ndim - 1) + [(0, pad)])
    return x


def pad_2d(w, to=LANE):
    r, c = w.shape
    return jnp.pad(w, ((0, (-r) % to), (0, (-c) % to)))


# ---------------------------------------------------------------------------
# Kernel: fused GraphConv (+ folded BatchNorm) + ReLU + partial SumPooling.
#
# grid = (N/TM, N/TK); k (A_hat column tiles) is the reduction axis.
#   acc [TM, Din] f32 :  sum_k A_hat[i,k] @ H[k,:]     (bf16 MXU, f32 accumulate)
#   at k == last      :  h_out = relu(acc @ W' + b')    (f32 epilogue)
#                        out[i]  = h_out (bf16, lane-dense)
#                        pool[i] = per-row-tile partial sum of h_out (8 sublanes wide)
# ---------------------------------------------------------------------------
def gcn_layer_kernel(ahat_ref, h_ref, w_ref, b_ref, out_ref, pool_ref, acc_ref):
    k = pl.program_id(1)

    @pl.when(k == 0)
    def _init():
        acc_ref[...] = jnp.zeros_like(acc_ref)

    # Neighbor aggregation on the MXU: [TM, TK](bf16) @ [TK, Din](bf16) -> f32.
    acc_ref[...] += jnp.dot(ahat_ref[...], h_ref[...],
                            preferred_element_type=jnp.float32)

    @pl.when(k == pl.num_programs(1) - 1)
    def _finalize():
        # Feature transform + folded-BN bias + ReLU, all in f32.
        z = jnp.dot(acc_ref[...], w_ref[...],
                    preferred_element_type=jnp.float32) + b_ref[...]
        h_out = jnp.maximum(z, 0.0)
        out_ref[...] = h_out.astype(out_ref.dtype)
        # Partial sum-pool for this row tile, kept 8 sublanes wide so the store is a
        # full (8, 128) tile; the final (tiny) reduction over row tiles happens outside.
        tm, dout = out_ref.shape
        pool_ref[...] = h_out.reshape(tm // 8, 8, dout).sum(axis=0)


def gcn_layer(ahat_bf16, h_bf16, w_folded, b_folded, *, tm=256, tk=256):
    """One fused GraphConv+BN+ReLU layer.

    Returns (H_out bf16 [N, Dout_pad], pooled partials f32 [grid_m*8, Dout_pad]).
    """
    n = ahat_bf16.shape[0]
    din = h_bf16.shape[1]
    dout = w_folded.shape[1]
    assert n % 8 == 0, "node count must be a multiple of 8 (sublane tiling)"
    tm = tm if n % tm == 0 else n
    tk = tk if n % tk == 0 else n
    grid_m, grid_k = n // tm, n // tk

    return pl.pallas_call(
        gcn_layer_kernel,
        grid=(grid_m, grid_k),
        in_specs=[
            pl.BlockSpec((tm, tk), lambda i, k: (i, k)),      # A_hat tile (bf16)
            pl.BlockSpec((tk, din), lambda i, k: (k, 0)),     # H tile (bf16)
            pl.BlockSpec((din, dout), lambda i, k: (0, 0)),   # folded W (f32, resident)
            pl.BlockSpec((1, dout), lambda i, k: (0, 0)),     # folded b (f32, resident)
        ],
        out_specs=(
            pl.BlockSpec((tm, dout), lambda i, k: (i, 0)),    # next-layer H (bf16)
            pl.BlockSpec((8, dout), lambda i, k: (i, 0)),     # pooled partials (f32)
        ),
        out_shape=(
            jax.ShapeDtypeStruct((n, dout), jnp.bfloat16),
            jax.ShapeDtypeStruct((grid_m * 8, dout), jnp.float32),
        ),
        scratch_shapes=[pltpu.VMEM((tm, din), jnp.float32)],
        compiler_params=pltpu.CompilerParams(
            # Row tiles are independent (megacore-parallel on v7x); the A_hat column
            # axis is the reduction and stays innermost / arbitrary.
            # NOTE: for large graphs, raise tm/tk (512-1024) and set vmem_limit_bytes
            # explicitly (64 MiB VMEM on v7x, 128 MiB on v5e/v6e).
            dimension_semantics=("parallel", "arbitrary"),
        ),
    )(ahat_bf16, h_bf16, w_folded, b_folded)


# ---------------------------------------------------------------------------
# Full GCN forward (hot path in Pallas, glue + tiny heads in plain JAX)
# ---------------------------------------------------------------------------
def gcn_forward(ahat, h0, params):
    """ahat: [N, N] f32 normalized adjacency; h0: [N, input_dim] f32 node features."""
    # The N^2 adjacency dominates traffic: stream it to the MXU in bf16.
    ahat_bf16 = ahat.astype(jnp.bfloat16)
    # Lane-pad features to 128 and keep the pad through the whole stack.
    h = pad_last(h0).astype(jnp.bfloat16)

    # Prediction head on the raw input features (hidden_rep[0]).
    # TODO(synk): final dropout is identity here (eval-mode semantics).
    wp0, bp0 = params["pred_layers"][0]
    pooled0 = jnp.sum(h0, axis=0, keepdims=True)                # [1, input_dim]
    score = jnp.dot(pooled0, wp0) + bp0                         # [1, output_dim]

    for li, lp in enumerate(params["gcn_layers"]):
        w_f, b_f = fold_bn(lp["w"], lp["b"], lp["gamma"], lp["beta"],
                           lp["mean"], lp["var"])
        h, pool_part = gcn_layer(ahat_bf16, h, pad_2d(w_f), pad_last(b_f))
        # Finish the fused sum-pool (tiny: grid_m*8 x 128) and apply the head.
        dhid = lp["w"].shape[1]
        pooled = jnp.sum(pool_part, axis=0)[None, :dhid]        # [1, Dhid] f32
        wp, bp = params["pred_layers"][li + 1]
        score = score + jnp.dot(pooled, wp) + bp
    return score


# ---------------------------------------------------------------------------
# Pure-JAX f32 reference (for correctness check)
# ---------------------------------------------------------------------------
def gcn_reference(ahat, h, params):
    hidden_rep = [h]
    for lp in params["gcn_layers"]:
        z = (ahat @ h) @ lp["w"] + lp["b"]
        s = lp["gamma"] / jnp.sqrt(lp["var"] + BN_EPS)
        z = (z - lp["mean"]) * s + lp["beta"]
        h = jnp.maximum(z, 0.0)
        hidden_rep.append(h)
    score = jnp.zeros((1, params["output_dim"]), jnp.float32)
    for i, hr in enumerate(hidden_rep):
        wp, bp = params["pred_layers"][i]
        score = score + jnp.sum(hr, axis=0, keepdims=True) @ wp + bp
    return score


def make_params(key, num_layers, input_dim, hidden_dim, output_dim):
    params = {"gcn_layers": [], "pred_layers": [], "output_dim": output_dim}
    for layer in range(num_layers - 1):
        din = input_dim if layer == 0 else hidden_dim
        key, k1, k2, k3, k4, k5, k6 = jax.random.split(key, 7)
        params["gcn_layers"].append({
            "w": 0.1 * jax.random.normal(k1, (din, hidden_dim), jnp.float32),
            "b": 0.05 * jax.random.normal(k2, (1, hidden_dim), jnp.float32),
            "gamma": 1.0 + 0.1 * jax.random.normal(k3, (1, hidden_dim), jnp.float32),
            "beta": 0.05 * jax.random.normal(k4, (1, hidden_dim), jnp.float32),
            "mean": 0.05 * jax.random.normal(k5, (1, hidden_dim), jnp.float32),
            "var": 1.0 + jnp.abs(0.1 * jax.random.normal(k6, (1, hidden_dim), jnp.float32)),
        })
    for layer in range(num_layers):
        din = input_dim if layer == 0 else hidden_dim
        key, k1, k2 = jax.random.split(key, 3)
        wp = 0.1 * jax.random.normal(k1, (din, output_dim), jnp.float32)
        bp = 0.05 * jax.random.normal(k2, (1, output_dim), jnp.float32)
        params["pred_layers"].append((wp, bp))
    return params


if __name__ == "__main__":
    # Single graph, 512 nodes -> exercises grid=(2, 2) tiling of the layer kernel.
    num_layers = 3        # -> 2 GraphConv layers, 3 prediction heads
    input_dim = 16
    hidden_dim = 32
    output_dim = 8
    n_nodes = 512

    key = jax.random.PRNGKey(0)
    key, k_adj, k_feat, k_par = jax.random.split(key, 4)

    # Random symmetric adjacency with self-loops, symmetrically normalized (norm='both').
    a = jax.random.bernoulli(k_adj, p=0.1, shape=(n_nodes, n_nodes)).astype(jnp.float32)
    a = jnp.clip(a + a.T, 0.0, 1.0)
    a = jnp.clip(a + jnp.eye(n_nodes, dtype=jnp.float32), 0.0, 1.0)
    deg = jnp.sum(a, axis=1)
    dinv = 1.0 / jnp.sqrt(deg)
    ahat = (dinv[:, None] * a) * dinv[None, :]

    # Node features [N, input_dim]
    h0 = jax.random.normal(k_feat, (n_nodes, input_dim), jnp.float32)
    params = make_params(k_par, num_layers, input_dim, hidden_dim, output_dim)

    forward = jax.jit(gcn_forward)
    score = forward(ahat, h0, params)
    jax.block_until_ready(score)
    assert score.shape == (1, output_dim)

    # Cross-check against a pure-JAX f32 reference (bf16 A_hat/H -> loose tolerance).
    ref = gcn_reference(ahat, h0, params)
    rel_err = float(jnp.max(jnp.abs(score - ref) / (jnp.abs(ref) + 1.0)))
    assert rel_err < 0.1, f"mismatch vs reference: rel_err={rel_err}"

    print("KERNEL_OK")
</pallas_src>

<mosaic_0001>
module attributes {stable_mosaic.version = 11 : i64} {
  func.func @gcn_layer_kernel(%arg0: i32, %arg1: i32, %arg2: memref<256x256xbf16, #tpu.memory_space<vmem>>, %arg3: memref<256x128xbf16, #tpu.memory_space<vmem>>, %arg4: memref<128x128xf32, #tpu.memory_space<vmem>>, %arg5: memref<1x128xf32, #tpu.memory_space<vmem>>, %arg6: memref<256x128xbf16, #tpu.memory_space<vmem>>, %arg7: memref<8x128xf32, #tpu.memory_space<vmem>>, %arg8: memref<256x128xf32, #tpu.memory_space<vmem>>) attributes {dimension_semantics = [#tpu.dimension_semantics<parallel>, #tpu.dimension_semantics<arbitrary>], iteration_bounds = array<i64: 2, 2>, scalar_prefetch = 0 : i64, scratch_operands = 1 : i64, tpu.core_type = #tpu.core_type<tc>, window_params = [{transform_indices = @transform_0, window_bounds = array<i64: 256, 256>}, {transform_indices = @transform_1, window_bounds = array<i64: 256, 128>}, {pipeline_mode = #tpu.pipeline_mode<synchronous>, transform_indices = @transform_2, window_bounds = array<i64: 128, 128>}, {pipeline_mode = #tpu.pipeline_mode<synchronous>, transform_indices = @transform_3, window_bounds = array<i64: 1, 128>}, {transform_indices = @transform_4, window_bounds = array<i64: 256, 128>}, {transform_indices = @transform_5, window_bounds = array<i64: 8, 128>}]} {
    %c0_i32 = arith.constant 0 : i32
    %0 = arith.cmpi eq, %arg1, %c0_i32 : i32
    %1 = arith.extui %0 : i1 to i32
    %c0_i32_0 = arith.constant 0 : i32
    %2 = arith.cmpi ne, %1, %c0_i32_0 : i32
    scf.if %2 {
      %cst_9 = arith.constant 0.000000e+00 : f32
      %12 = vector.broadcast %cst_9 : f32 to vector<256x128xf32>
      %c0_10 = arith.constant 0 : index
      %c0_11 = arith.constant 0 : index
      %13 = vector.load %arg8[%c0_10, %c0_11] : memref<256x128xf32, #tpu.memory_space<vmem>>, vector<256x128xf32>
      tpu.vector_store %arg8[%c0_10, %c0_11], %12 {strides = array<i32>} : memref<256x128xf32, #tpu.memory_space<vmem>>, vector<256x128xf32>,
    } else {
    }
    %c0 = arith.constant 0 : index
    %c0_1 = arith.constant 0 : index
    %3 = vector.load %arg8[%c0, %c0_1] : memref<256x128xf32, #tpu.memory_space<vmem>>, vector<256x128xf32>
    %c0_2 = arith.constant 0 : index
    %c0_3 = arith.constant 0 : index
    %4 = vector.load %arg2[%c0_2, %c0_3] : memref<256x256xbf16, #tpu.memory_space<vmem>>, vector<256x256xbf16>
    %c0_4 = arith.constant 0 : index
    %c0_5 = arith.constant 0 : index
    %5 = vector.load %arg3[%c0_4, %c0_5] : memref<256x128xbf16, #tpu.memory_space<vmem>>, vector<256x128xbf16>
    %cst = arith.constant dense<0.000000e+00> : vector<256x128xf32>
    %6 = tpu.matmul %4, %5, %cst {dimension_numbers = #tpu.dot_dimension_numbers<[1], [0], [0], [1], [0, 0, 1, 1], [], []>} : vector<256x256xbf16>, vector<256x128xbf16>, vector<256x128xf32> -> vector<256x128xf32>
    %7 = arith.addf %3, %6 : vector<256x128xf32>
    %c0_6 = arith.constant 0 : index
    %c0_7 = arith.constant 0 : index
    %8 = vector.load %arg8[%c0_6, %c0_7] : memref<256x128xf32, #tpu.memory_space<vmem>>, vector<256x128xf32>
    tpu.vector_store %arg8[%c0_6, %c0_7], %7 {strides = array<i32>} : memref<256x128xf32, #tpu.memory_space<vmem>>, vector<256x128xf32>,
    %c1_i32 = arith.constant 1 : i32
    %9 = arith.cmpi eq, %arg1, %c1_i32 : i32
    %10 = arith.extui %9 : i1 to i32
    %c0_i32_8 = arith.constant 0 : i32
    %11 = arith.cmpi ne, %10, %c0_i32_8 : i32
    scf.if %11 {
      %c0_9 = arith.constant 0 : index
      %c0_10 = arith.constant 0 : index
      %12 = vector.load %arg8[%c0_9, %c0_10] : memref<256x128xf32, #tpu.memory_space<vmem>>, vector<256x128xf32>
      %c0_11 = arith.constant 0 : index
      %c0_12 = arith.constant 0 : index
      %13 = vector.load %arg4[%c0_11, %c0_12] : memref<128x128xf32, #tpu.memory_space<vmem>>, vector<128x128xf32>
      %cst_13 = arith.constant dense<0.000000e+00> : vector<256x128xf32>
      %14 = tpu.matmul %12, %13, %cst_13 {dimension_numbers = #tpu.dot_dimension_numbers<[1], [0], [0], [1], [0, 0, 1, 1], [], []>} : vector<256x128xf32>, vector<128x128xf32>, vector<256x128xf32> -> vector<256x128xf32>
      %c0_14 = arith.constant 0 : index
      %c0_15 = arith.constant 0 : index
      %15 = vector.load %arg5[%c0_14, %c0_15] : memref<1x128xf32, #tpu.memory_space<vmem>>, vector<1x128xf32>
      %16 = vector.broadcast %15 : vector<1x128xf32> to vector<256x128xf32>
      %17 = arith.addf %14, %16 : vector<256x128xf32>
      %cst_16 = arith.constant 0.000000e+00 : f32
      %18 = vector.broadcast %cst_16 : f32 to vector<256x128xf32>
      %19 = arith.maximumf %17, %18 : vector<256x128xf32>
      %20 = arith.truncf %19 : vector<256x128xf32> to vector<256x128xbf16>
      %c0_17 = arith.constant 0 : index
      %c0_18 = arith.constant 0 : index
      %21 = vector.load %arg6[%c0_17, %c0_18] : memref<256x128xbf16, #tpu.memory_space<vmem>>, vector<256x128xbf16>
      tpu.vector_store %arg6[%c0_17, %c0_18], %20 {strides = array<i32>} : memref<256x128xbf16, #tpu.memory_space<vmem>>, vector<256x128xbf16>,
      %22 = vector.shape_cast %19 : vector<256x128xf32> to vector<32x8x128xf32>
      %cst_19 = arith.constant dense<0.000000e+00> : vector<8x128xf32>
      %23 = vector.multi_reduction <add>, %22, %cst_19 [0] : vector<32x8x128xf32> to vector<8x128xf32>
      %c0_20 = arith.constant 0 : index
      %c0_21 = arith.constant 0 : index
      %24 = vector.load %arg7[%c0_20, %c0_21] : memref<8x128xf32, #tpu.memory_space<vmem>>, vector<8x128xf32>
      tpu.vector_store %arg7[%c0_20, %c0_21], %23 {strides = array<i32>} : memref<8x128xf32, #tpu.memory_space<vmem>>, vector<8x128xf32>,
    } else {
    }
    return
  }
  func.func @transform_0(%arg0: i32, %arg1: i32) -> (i32, i32) {
    %c0_i32 = arith.constant 0 : i32
    return %arg0, %arg1 : i32, i32
  }
  func.func @transform_1(%arg0: i32, %arg1: i32) -> (i32, i32) {
    %c0_i32 = arith.constant 0 : i32
    %c0_i32_0 = arith.constant 0 : i32
    return %arg1, %c0_i32 : i32, i32
  }
  func.func @transform_2(%arg0: i32, %arg1: i32) -> (i32, i32) {
    %c0_i32 = arith.constant 0 : i32
    %c0_i32_0 = arith.constant 0 : i32
    %c0_i32_1 = arith.constant 0 : i32
    return %c0_i32, %c0_i32_0 : i32, i32
  }
  func.func @transform_3(%arg0: i32, %arg1: i32) -> (i32, i32) {
    %c0_i32 = arith.constant 0 : i32
    %c0_i32_0 = arith.constant 0 : i32
    %c0_i32_1 = arith.constant 0 : i32
    return %c0_i32, %c0_i32_0 : i32, i32
  }
  func.func @transform_4(%arg0: i32, %arg1: i32) -> (i32, i32) {
    %c0_i32 = arith.constant 0 : i32
    %c0_i32_0 = arith.constant 0 : i32
    return %arg0, %c0_i32 : i32, i32
  }
  func.func @transform_5(%arg0: i32, %arg1: i32) -> (i32, i32) {
    %c0_i32 = arith.constant 0 : i32
    %c0_i32_0 = arith.constant 0 : i32
    return %arg0, %c0_i32 : i32, i32
  }
}

module attributes {stable_mosaic.version = 11 : i64} {
  func.func @gcn_layer_kernel(%arg0: i32, %arg1: i32, %arg2: memref<256x256xbf16, #tpu.memory_space<vmem>>, %arg3: memref<256x128xbf16, #tpu.memory_space<vmem>>, %arg4: memref<128x128xf32, #tpu.memory_space<vmem>>, %arg5: memref<1x128xf32, #tpu.memory_space<vmem>>, %arg6: memref<256x128xbf16, #tpu.memory_space<vmem>>, %arg7: memref<8x128xf32, #tpu.memory_space<vmem>>, %arg8: memref<256x128xf32, #tpu.memory_space<vmem>>) attributes {dimension_semantics = [#tpu.dimension_semantics<parallel>, #tpu.dimension_semantics<arbitrary>], iteration_bounds = array<i64: 2, 2>, scalar_prefetch = 0 : i64, scratch_operands = 1 : i64, tpu.core_type = #tpu.core_type<tc>, window_params = [{transform_indices = @transform_0, window_bounds = array<i64: 256, 256>}, {transform_indices = @transform_1, window_bounds = array<i64: 256, 128>}, {pipeline_mode = #tpu.pipeline_mode<synchronous>, transform_indices = @transform_2, window_bounds = array<i64: 128, 128>}, {pipeline_mode = #tpu.pipeline_mode<synchronous>, transform_indices = @transform_3, window_bounds = array<i64: 1, 128>}, {transform_indices = @transform_4, window_bounds = array<i64: 256, 128>}, {transform_indices = @transform_5, window_bounds = array<i64: 8, 128>}]} {
    %c0_i32 = arith.constant 0 : i32
    %0 = arith.cmpi eq, %arg1, %c0_i32 : i32
    %1 = arith.extui %0 : i1 to i32
    %c0_i32_0 = arith.constant 0 : i32
    %2 = arith.cmpi ne, %1, %c0_i32_0 : i32
    scf.if %2 {
      %cst_9 = arith.constant 0.000000e+00 : f32
      %12 = vector.broadcast %cst_9 : f32 to vector<256x128xf32>
      %c0_10 = arith.constant 0 : index
      %c0_11 = arith.constant 0 : index
      %13 = vector.load %arg8[%c0_10, %c0_11] : memref<256x128xf32, #tpu.memory_space<vmem>>, vector<256x128xf32>
      tpu.vector_store %arg8[%c0_10, %c0_11], %12 {strides = array<i32>} : memref<256x128xf32, #tpu.memory_space<vmem>>, vector<256x128xf32>,
    } else {
    }
    %c0 = arith.constant 0 : index
    %c0_1 = arith.constant 0 : index
    %3 = vector.load %arg8[%c0, %c0_1] : memref<256x128xf32, #tpu.memory_space<vmem>>, vector<256x128xf32>
    %c0_2 = arith.constant 0 : index
    %c0_3 = arith.constant 0 : index
    %4 = vector.load %arg2[%c0_2, %c0_3] : memref<256x256xbf16, #tpu.memory_space<vmem>>, vector<256x256xbf16>
    %c0_4 = arith.constant 0 : index
    %c0_5 = arith.constant 0 : index
    %5 = vector.load %arg3[%c0_4, %c0_5] : memref<256x128xbf16, #tpu.memory_space<vmem>>, vector<256x128xbf16>
    %cst = arith.constant dense<0.000000e+00> : vector<256x128xf32>
    %6 = tpu.matmul %4, %5, %cst {dimension_numbers = #tpu.dot_dimension_numbers<[1], [0], [0], [1], [0, 0, 1, 1], [], []>} : vector<256x256xbf16>, vector<256x128xbf16>, vector<256x128xf32> -> vector<256x128xf32>
    %7 = arith.addf %3, %6 : vector<256x128xf32>
    %c0_6 = arith.constant 0 : index
    %c0_7 = arith.constant 0 : index
    %8 = vector.load %arg8[%c0_6, %c0_7] : memref<256x128xf32, #tpu.memory_space<vmem>>, vector<256x128xf32>
    tpu.vector_store %arg8[%c0_6, %c0_7], %7 {strides = array<i32>} : memref<256x128xf32, #tpu.memory_space<vmem>>, vector<256x128xf32>,
    %c1_i32 = arith.constant 1 : i32
    %9 = arith.cmpi eq, %arg1, %c1_i32 : i32
    %10 = arith.extui %9 : i1 to i32
    %c0_i32_8 = arith.constant 0 : i32
    %11 = arith.cmpi ne, %10, %c0_i32_8 : i32
    scf.if %11 {
      %c0_9 = arith.constant 0 : index
      %c0_10 = arith.constant 0 : index
      %12 = vector.load %arg8[%c0_9, %c0_10] : memref<256x128xf32, #tpu.memory_space<vmem>>, vector<256x128xf32>
      %c0_11 = arith.constant 0 : index
      %c0_12 = arith.constant 0 : index
      %13 = vector.load %arg4[%c0_11, %c0_12] : memref<128x128xf32, #tpu.memory_space<vmem>>, vector<128x128xf32>
      %cst_13 = arith.constant dense<0.000000e+00> : vector<256x128xf32>
      %14 = tpu.matmul %12, %13, %cst_13 {dimension_numbers = #tpu.dot_dimension_numbers<[1], [0], [0], [1], [0, 0, 1, 1], [], []>} : vector<256x128xf32>, vector<128x128xf32>, vector<256x128xf32> -> vector<256x128xf32>
      %c0_14 = arith.constant 0 : index
      %c0_15 = arith.constant 0 : index
      %15 = vector.load %arg5[%c0_14, %c0_15] : memref<1x128xf32, #tpu.memory_space<vmem>>, vector<1x128xf32>
      %16 = vector.broadcast %15 : vector<1x128xf32> to vector<256x128xf32>
      %17 = arith.addf %14, %16 : vector<256x128xf32>
      %cst_16 = arith.constant 0.000000e+00 : f32
      %18 = vector.broadcast %cst_16 : f32 to vector<256x128xf32>
      %19 = arith.maximumf %17, %18 : vector<256x128xf32>
      %20 = arith.truncf %19 : vector<256x128xf32> to vector<256x128xbf16>
      %c0_17 = arith.constant 0 : index
      %c0_18 = arith.constant 0 : index
      %21 = vector.load %arg6[%c0_17, %c0_18] : memref<256x128xbf16, #tpu.memory_space<vmem>>, vector<256x128xbf16>
      tpu.vector_store %arg6[%c0_17, %c0_18], %20 {strides = array<i32>} : memref<256x128xbf16, #tpu.memory_space<vmem>>, vector<256x128xbf16>,
      %22 = vector.shape_cast %19 : vector<256x128xf32> to vector<32x8x128xf32>
      %cst_19 = arith.constant dense<0.000000e+00> : vector<8x128xf32>
      %23 = vector.multi_reduction <add>, %22, %cst_19 [0] : vector<32x8x128xf32> to vector<8x128xf32>
      %c0_20 = arith.constant 0 : index
      %c0_21 = arith.constant 0 : index
      %24 = vector.load %arg7[%c0_20, %c0_21] : memref<8x128xf32, #tpu.memory_space<vmem>>, vector<8x128xf32>
      tpu.vector_store %arg7[%c0_20, %c0_21], %23 {strides = array<i32>} : memref<8x128xf32, #tpu.memory_space<vmem>>, vector<8x128xf32>,
    } else {
    }
    return
  }
  func.func @transform_0(%arg0: i32, %arg1: i32) -> (i32, i32) {
    %c0_i32 = arith.constant 0 : i32
    return %arg0, %arg1 : i32, i32
  }
  func.func @transform_1(%arg0: i32, %arg1: i32) -> (i32, i32) {
    %c0_i32 = arith.constant 0 : i32
    %c0_i32_0 = arith.constant 0 : i32
    return %arg1, %c0_i32 : i32, i32
  }
  func.func @transform_2(%arg0: i32, %arg1: i32) -> (i32, i32) {
    %c0_i32 = arith.constant 0 : i32
    %c0_i32_0 = arith.constant 0 : i32
    %c0_i32_1 = arith.constant 0 : i32
    return %c0_i32, %c0_i32_0 : i32, i32
  }
  func.func @transform_3(%arg0: i32, %arg1: i32) -> (i32, i32) {
    %c0_i32 = arith.constant 0 : i32
    %c0_i32_0 = arith.constant 0 : i32
    %c0_i32_1 = arith.constant 0 : i32
    return %c0_i32, %c0_i32_0 : i32, i32
  }
  func.func @transform_4(%arg0: i32, %arg1: i32) -> (i32, i32) {
    %c0_i32 = arith.constant 0 : i32
    %c0_i32_0 = arith.constant 0 : i32
    return %arg0, %c0_i32 : i32, i32
  }
  func.func @transform_5(%arg0: i32, %arg1: i32) -> (i32, i32) {
    %c0_i32 = arith.constant 0 : i32
    %c0_i32_0 = arith.constant 0 : i32
    return %arg0, %c0_i32 : i32, i32
  }
}

</mosaic_0001>

<bundles_post_ra>
// kernel: gcn_forward.2
= control target key start
LH: loop header
LB: loop body
LE: loop exit
PB: predicated region body
PF: predicated region fallthrough
CT: control target
= control target key end

     0   :  { %s2420_s18 = smov 0   ;;  %s2422_s19 = smov 0   ;;  %s2818_s0 = inlined_call_operand.vmem [shape: bf16[512,512], index: 0, kind: input, shape index: {}]   ;;  %s2819_s1 = inlined_call_operand.vmem [shape: bf16[512,128], index: 1, kind: input, shape index: {}]   ;;  %s2820_s2 = inlined_call_operand.vmem [shape: f32[128,128], index: 2, kind: input, shape index: {}]   ;;  %s2821_s3 = inlined_call_operand.vmem [shape: f32[1,128], index: 3, kind: input, shape index: {}]   ;;  %s2822_s4 = inlined_call_operand.vmem [shape: bf16[512,128], index: 4, kind: output, shape index: {0}]   ;;  %s2823_s5 = inlined_call_operand.vmem [shape: f32[16,128], index: 5, kind: output, shape index: {1}]  }
   0x1   :  { %s2424_s20 = smov 0   ;;  %s2426_s21 = smov 0  }
   0x2   :  { %s2428_s22 = smov 0   ;;  %s2430_s23 = smov 0  }
   0x3   :  { %s2432_s24 = smov 0  }
   0x4 LB: > { %s25_s25 = sadd.s32 1, %s2379_s22  ;;  %s28_s26 = sadd.s32 1, %s2383_s23  ;;  %s2387_s24 = sphi %s2432_s24, %s16_s24   ;;  %s2383_s23 = sphi %s2430_s23, %s2829_s23   ;;  %s2379_s22 = sphi %s2428_s22, %s2828_s22   ;;  %s2375_s21 = sphi %s2426_s21, %s2827_s21   ;;  %s2371_s20 = sphi %s2424_s20, %s2826_s20   ;;  %s2367_s19 = sphi %s2422_s19, %s2825_s19   ;;  %s2363_s18 = sphi %s2420_s18, %s2824_s18  }
   0x5   : > { %p26_p0 = scmp.ge.s32.totalorder %s25_s25, 2  ;;  %p44_p1 = scmp.ne.s32.totalorder %s2367_s19, %s2363_s18 }
   0x6   : > { %p45_p2 = scmp.eq.s32.totalorder %s2387_s24, 0  ;;  %s37_s30 = sadd.s32 1, %s2367_s19 }
   0x7   : > { %s2831_s25 = smov (%p26_p0, %s25_s25), 0  ;;  %s2833_s26 = smov (!%p26_p0, %s28_s26), %s2383_s23 }
   0x8   : > { %p46_p3 = por %p45_p2, %p44_p1  ;;  %p30_p4 = scmp.ge.s32.totalorder %s2833_s26, 2 }
   0x9   : > { %s33_s27 = ssub.s32 %s2379_s22, %s2831_s25  ;;  %p1682_p6 = scmp.ge.s32.totalorder %s2387_s24, 4 }
   0xa   : > { %s2835_s26 = smov (%p30_p4, %s2833_s26), 0 }
   0xb   : > { %s32_s28 = ssub.s32 %s2383_s23, %s2835_s26  ;;  %196 = sbr.rel (%p1682_p6) target bundleno = 41 (0x29), region = 24 }
   0xc   : > { %s34_s29 = sor.u32 %s33_s27, %s32_s28 }
   0xd   : > { %p35_p5 = scmp.eq.s32.totalorder %s34_s29, 0 }
   0xf   : > { %s2471_s6 = scalar_select %p35_p5, %s2367_s19, %s37_s30  }
  0x12   : > { %199 = sbr.rel (!%p46_p3) target bundleno = 41 (0x29), region = 28  ;;  %s201_s7 = sand.u32 (%p46_p3), 1, %s2367_s19  }
  0x13   : > { %s1685_s8 = sshll.u32 (%p46_p3), %s2379_s22, 1  ;;  %s1683_s9 = sshll.u32 (%p46_p3), %s201_s7, 8 }
  0x14   : > { %s1780_s10 = sshll.u32 (%p46_p3), %s2383_s23, 7  ;;  %s2485_s16 = scalar_lea.vmem (%p46_p3), [#allocation3], %s1683_s9 }
  0x15   : > { %s207_s11 = sadd.s32 (%p46_p3), %s1780_s10, %s1685_s8 }
  0x16   : > { %s1687_s12 = sshll.u32 (%p46_p3), %s207_s11, 2 }
  0x17   : > { %s2480_s15 = scalar_lea.vmem (%p46_p3), %s2818_s0, %s1687_s12 }
  0x18   : > { %v299_v0 = vld [vmem:[%s2480_s15] sm:$0xff] (%p46_p3)  ;;  %v301_v1 = vld [vmem:[%s2480_s15 + $0x10] sm:$0xff] (%p46_p3) }
  0x19   : > { %v303_v2 = vld [vmem:[%s2480_s15 + $0x20] sm:$0xff]  ;;  %300 = vst [vmem:[%s2485_s16] sm:$0xff] %v299_v0  ;;  %302 = vst [vmem:[%s2485_s16 + $0x8] sm:$0xff] %v301_v1  ;;  %v305_v3 = vld [vmem:[%s2480_s15 + $0x30] sm:$0xff] }
  0x1a   : > { %304 = vst [vmem:[%s2485_s16 + $0x10] sm:$0xff] %v303_v2  ;;  %v307_v4 = vld [vmem:[%s2480_s15 + $0x40] sm:$0xff]  ;;  %v309_v5 = vld [vmem:[%s2480_s15 + $0x50] sm:$0xff]  ;;  %306 = vst [vmem:[%s2485_s16 + $0x18] sm:$0xff] %v305_v3 }
  0x1b   : > { %308 = vst [vmem:[%s2485_s16 + $0x20] sm:$0xff] %v307_v4  ;;  %310 = vst [vmem:[%s2485_s16 + $0x28] sm:$0xff] %v309_v5  ;;  %v311_v6 = vld [vmem:[%s2480_s15 + $0x60] sm:$0xff]  ;;  %v313_v7 = vld [vmem:[%s2480_s15 + $0x70] sm:$0xff] }
  0x1c   : > { %v315_v8 = vld [vmem:[%s2480_s15 + $0x80] sm:$0xff]  ;;  %312 = vst [vmem:[%s2485_s16 + $0x30] sm:$0xff] %v311_v6  ;;  %314 = vst [vmem:[%s2485_s16 + $0x38] sm:$0xff] %v313_v7  ;;  %v317_v9 = vld [vmem:[%s2480_s15 + $0x90] sm:$0xff] }
  0x1d   : > { %316 = vst [vmem:[%s2485_s16 + $0x40] sm:$0xff] %v315_v8  ;;  %v319_v10 = vld [vmem:[%s2480_s15 + $0xa0] sm:$0xff]  ;;  %v321_v11 = vld [vmem:[%s2480_s15 + $0xb0] sm:$0xff]  ;;  %318 = vst [vmem:[%s2485_s16 + $0x48] sm:$0xff] %v317_v9 }
  0x1e   : > { %320 = vst [vmem:[%s2485_s16 + $0x50] sm:$0xff] %v319_v10  ;;  %322 = vst [vmem:[%s2485_s16 + $0x58] sm:$0xff] %v321_v11  ;;  %v323_v12 = vld [vmem:[%s2480_s15 + $0xc0] sm:$0xff]  ;;  %v325_v13 = vld [vmem:[%s2480_s15 + $0xd0] sm:$0xff] }
  0x1f   : > { %v327_v14 = vld [vmem:[%s2480_s15 + $0xe0] sm:$0xff]  ;;  %324 = vst [vmem:[%s2485_s16 + $0x60] sm:$0xff] %v323_v12  ;;  %326 = vst [vmem:[%s2485_s16 + $0x68] sm:$0xff] %v325_v13  ;;  %v329_v15 = vld [vmem:[%s2480_s15 + $0xf0] sm:$0xff] }
  0x20   : > { %328 = vst [vmem:[%s2485_s16 + $0x70] sm:$0xff] %v327_v14  ;;  %v331_v16 = vld [vmem:[%s2480_s15 + $0x100] sm:$0xff]  ;;  %v333_v17 = vld [vmem:[%s2480_s15 + $0x110] sm:$0xff]  ;;  %330 = vst [vmem:[%s2485_s16 + $0x78] sm:$0xff] %v329_v15 }
  0x21   : > { %332 = vst [vmem:[%s2485_s16 + $0x80] sm:$0xff] %v331_v16  ;;  %334 = vst [vmem:[%s2485_s16 + $0x88] sm:$0xff] %v333_v17  ;;  %v335_v18 = vld [vmem:[%s2480_s15 + $0x120] sm:$0xff]  ;;  %v337_v19 = vld [vmem:[%s2480_s15 + $0x130] sm:$0xff] }
  0x22   : > { %v339_v20 = vld [vmem:[%s2480_s15 + $0x140] sm:$0xff]  ;;  %336 = vst [vmem:[%s2485_s16 + $0x90] sm:$0xff] %v335_v18  ;;  %338 = vst [vmem:[%s2485_s16 + $0x98] sm:$0xff] %v337_v19  ;;  %v341_v21 = vld [vmem:[%s2480_s15 + $0x150] sm:$0xff] }
  0x23   : > { %340 = vst [vmem:[%s2485_s16 + $0xa0] sm:$0xff] %v339_v20  ;;  %v343_v22 = vld [vmem:[%s2480_s15 + $0x160] sm:$0xff]  ;;  %v345_v23 = vld [vmem:[%s2480_s15 + $0x170] sm:$0xff]  ;;  %342 = vst [vmem:[%s2485_s16 + $0xa8] sm:$0xff] %v341_v21 }
  0x24   : > { %344 = vst [vmem:[%s2485_s16 + $0xb0] sm:$0xff] %v343_v22  ;;  %346 = vst [vmem:[%s2485_s16 + $0xb8] sm:$0xff] %v345_v23  ;;  %v347_v24 = vld [vmem:[%s2480_s15 + $0x180] sm:$0xff]  ;;  %v349_v25 = vld [vmem:[%s2480_s15 + $0x190] sm:$0xff] }
  0x25   : > { %v351_v26 = vld [vmem:[%s2480_s15 + $0x1a0] sm:$0xff]  ;;  %348 = vst [vmem:[%s2485_s16 + $0xc0] sm:$0xff] %v347_v24  ;;  %350 = vst [vmem:[%s2485_s16 + $0xc8] sm:$0xff] %v349_v25  ;;  %v353_v27 = vld [vmem:[%s2480_s15 + $0x1b0] sm:$0xff] }
  0x26   : > { %352 = vst [vmem:[%s2485_s16 + $0xd0] sm:$0xff] %v351_v26  ;;  %v355_v28 = vld [vmem:[%s2480_s15 + $0x1c0] sm:$0xff]  ;;  %v357_v29 = vld [vmem:[%s2480_s15 + $0x1d0] sm:$0xff]  ;;  %354 = vst [vmem:[%s2485_s16 + $0xd8] sm:$0xff] %v353_v27 }
  0x27   : > { %356 = vst [vmem:[%s2485_s16 + $0xe0] sm:$0xff] %v355_v28  ;;  %358 = vst [vmem:[%s2485_s16 + $0xe8] sm:$0xff] %v357_v29  ;;  %v359_v30 = vld [vmem:[%s2480_s15 + $0x1e0] sm:$0xff]  ;;  %v361_v31 = vld [vmem:[%s2480_s15 + $0x1f0] sm:$0xff] }
  0x28   : > { %360 = vst [vmem:[%s2485_s16 + $0xf0] sm:$0xff] %v359_v30  ;;  %362 = vst [vmem:[%s2485_s16 + $0xf8] sm:$0xff] %v361_v31 }
  0x29 PF: > { %p1688_p7 = scmp.ge.s32.totalorder %s2387_s24, 1  ;;  %p376_p8 = scmp.lt.s32.totalorder %s2387_s24, 5 }
  0x2b   : > { %p377_p9 = pnand %p1688_p7, %p376_p8 }
  0x2c   : > { %s383_s17 = sand.u32 (!%p377_p9), 1, %s2363_s18   ;;  %s1690_s27 = sshll.u32 (!%p377_p9), %s2371_s20, 5 }
  0x2d   : > { %380 = sbr.rel (%p377_p9) target bundleno = 670 (0x29e), region = 70  ;;  %s1689_s28 = sshll.u32 (!%p377_p9), %s383_s17, 8 }
  0x2e   : > { %p422_p10 = scmp.lt.s32.totalorder (!%p377_p9), %s1690_s27, 63  ;;  %s1692_s29 = sshll.u32 (!%p377_p9), %s2375_s21, 5 }
  0x2f   : > { %p428_p11 = scmp.lt.s32.totalorder (!%p377_p9), %s1692_s29, 63  ;;  %p433_p12 = scmp.lt.s32.totalorder (!%p377_p9), %s2375_s21, 1 }
  0x30   : > { %s2570_s17 = scalar_lea.vmem (!%p377_p9), [#allocation3], %s1689_s28  ;;  %p1695_p13 = scmp.ne.s32.totalorder (!%p377_p9), %s2371_s20, 0 }
  0x34   : > { %s2837_s27 = smov (!%p422_p10, %s1690_s27), 63  ;;  %s2839_s29 = smov (!%p428_p11, %s1692_s29), 63 }
  0x35   : > { %s1691_s30 = sshll.u32 %s2837_s27, 2  ;;  %s2841_s21 = smov (!%p433_p12, %s2375_s21), 1  ;;  %v2389_v32 = vmov (!%p1695_p13), 0.0  }
  0x36   : > { %s2557_s9 = scalar_lea.vmem %s2819_s1, %s1691_s30  ;;  %s1693_s10 = sshll.u32 %s2839_s29, 2  ;;  %442 = vst [vmem:[#allocation2] sm:$0xff] (!%p1695_p13), %v2389_v32  ;;  %443 = vst [vmem:[#allocation2 + $0x8] sm:$0xff] (!%p1695_p13), %v2389_v32 }
  0x37   : > { %s2563_s18 = scalar_lea.vmem %s2822_s4, %s1693_s10  ;;  %s1694_s13 = sshll.u32 %s2841_s21, 3  ;;  %444 = vst [vmem:[#allocation2 + $0x10] sm:$0xff] (!%p1695_p13), %v2389_v32  ;;  %445 = vst [vmem:[#allocation2 + $0x18] sm:$0xff] (!%p1695_p13), %v2389_v32 }
  0x38   : > { %s2568_s16 = scalar_lea.vmem %s2823_s5, %s1694_s13  ;;  %441 = sbr.rel (%p1695_p13) target bundleno = 70 (0x46), region = 78  ;;  %446 = vst [vmem:[#allocation2 + $0x20] sm:$0xff] (!%p1695_p13), %v2389_v32  ;;  %447 = vst [vmem:[#allocation2 + $0x28] sm:$0xff] (!%p1695_p13), %v2389_v32 }
  0x39   : > { %448 = vst [vmem:[#allocation2 + $0x30] sm:$0xff] (!%p1695_p13), %v2389_v32  ;;  %449 = vst [vmem:[#allocation2 + $0x38] sm:$0xff] (!%p1695_p13), %v2389_v32 }
  0x3a   : > { %450 = vst [vmem:[#allocation2 + $0x40] sm:$0xff] (!%p1695_p13), %v2389_v32  ;;  %451 = vst [vmem:[#allocation2 + $0x48] sm:$0xff] (!%p1695_p13), %v2389_v32 }
  0x3b   : > { %452 = vst [vmem:[#allocation2 + $0x50] sm:$0xff] (!%p1695_p13), %v2389_v32  ;;  %453 = vst [vmem:[#allocation2 + $0x58] sm:$0xff] (!%p1695_p13), %v2389_v32 }
  0x3c   : > { %454 = vst [vmem:[#allocation2 + $0x60] sm:$0xff] (!%p1695_p13), %v2389_v32  ;;  %455 = vst [vmem:[#allocation2 + $0x68] sm:$0xff] (!%p1695_p13), %v2389_v32 }
  0x3d   : > { %456 = vst [vmem:[#allocation2 + $0x70] sm:$0xff] (!%p1695_p13), %v2389_v32  ;;  %457 = vst [vmem:[#allocation2 + $0x78] sm:$0xff] (!%p1695_p13), %v2389_v32 }
  0x3e   : > { %458 = vst [vmem:[#allocation2 + $0x80] sm:$0xff] (!%p1695_p13), %v2389_v32  ;;  %459 = vst [vmem:[#allocation2 + $0x88] sm:$0xff] (!%p1695_p13), %v2389_v32 }
  0x3f   : > { %460 = vst [vmem:[#allocation2 + $0x90] sm:$0xff] %v2389_v32  ;;  %461 = vst [vmem:[#allocation2 + $0x98] sm:$0xff] %v2389_v32 }
  0x40   : > { %462 = vst [vmem:[#allocation2 + $0xa0] sm:$0xff] %v2389_v32  ;;  %463 = vst [vmem:[#allocation2 + $0xa8] sm:$0xff] %v2389_v32 }
  0x41   : > { %464 = vst [vmem:[#allocation2 + $0xb0] sm:$0xff] %v2389_v32  ;;  %465 = vst [vmem:[#allocation2 + $0xb8] sm:$0xff] %v2389_v32 }
  0x42   : > { %466 = vst [vmem:[#allocation2 + $0xc0] sm:$0xff] %v2389_v32  ;;  %467 = vst [vmem:[#allocation2 + $0xc8] sm:$0xff] %v2389_v32 }
  0x43   : > { %468 = vst [vmem:[#allocation2 + $0xd0] sm:$0xff] %v2389_v32  ;;  %469 = vst [vmem:[#allocation2 + $0xd8] sm:$0xff] %v2389_v32 }
  0x44   : > { %470 = vst [vmem:[#allocation2 + $0xe0] sm:$0xff] %v2389_v32  ;;  %471 = vst [vmem:[#allocation2 + $0xe8] sm:$0xff] %v2389_v32 }
  0x45   : > { %472 = vst [vmem:[#allocation2 + $0xf0] sm:$0xff] %v2389_v32  ;;  %473 = vst [vmem:[#allocation2 + $0xf8] sm:$0xff] %v2389_v32 }
  0x46 PF: > { %v2269_v33 = vld [vmem:[%s2557_s9 + $0x40] sm:$0xff]   ;;  %v2271_v35 = vld [vmem:[%s2557_s9 + $0x48] sm:$0xff]   ;;  %v2273_v37 = vld [vmem:[%s2557_s9 + $0x50] sm:$0xff]   ;;  %p1744_p0 = scmp.ne.s32.totalorder %s2371_s20, 1 }
  0x47   : > { %v2270_v34 = vld [vmem:[%s2557_s9] sm:$0xff]   ;;  %1908 = vmatprep.subr.bf16.mxu0 %v2269_v33  ;;  %2180 = vmatprep.subr.bf16.mxu1 %v2269_v33  ;;  %v2272_v36 = vld [vmem:[%s2557_s9 + $0x8] sm:$0xff]   ;;  %v2274_v38 = vld [vmem:[%s2557_s9 + $0x10] sm:$0xff]  }
  0x48   : > { %1909 = vmatpush3.bf16.msra.mxu0 %v2270_v34  ;;  %2188 = vmatpush3.bf16.msra.mxu1 %v2270_v34  ;;  %v2275_v39 = vld [vmem:[%s2557_s9 + $0x58] sm:$0xff]   ;;  %v2277_v41 = vld [vmem:[%s2557_s9 + $0x60] sm:$0xff]   ;;  %v2279_v43 = vld [vmem:[%s2557_s9 + $0x68] sm:$0xff]  }
  0x49   : > { %1910 = vmatprep.subr.bf16.mxu0 %v2271_v35  ;;  %2181 = vmatprep.subr.bf16.mxu1 %v2271_v35  ;;  %v2276_v40 = vld [vmem:[%s2557_s9 + $0x18] sm:$0xff]   ;;  %v2278_v42 = vld [vmem:[%s2557_s9 + $0x20] sm:$0xff]   ;;  %v2280_v46 = vld [vmem:[%s2557_s9 + $0x28] sm:$0xff]  }
  0x4a   : > { %v2287_v44 = vld [vmem:[%s2570_s17 + $0x4] ss:$8 sps:$4 sm:$0xff]   ;;  %v2281_v47 = vld [vmem:[%s2557_s9 + $0x70] sm:$0xff]   ;;  %v2283_v49 = vld [vmem:[%s2557_s9 + $0x78] sm:$0xff]  }
  0x4b   : > { %v2290_v45 = vld [vmem:[%s2570_s17 + $0x84] ss:$8 sps:$4 sm:$0xff]   ;;  %858 = vmatprep.mubr.bf16.mxu0 %v2287_v44  ;;  %v2282_v48 = vld [vmem:[%s2557_s9 + $0x30] sm:$0xff]   ;;  %v2284_v50 = vld [vmem:[%s2557_s9 + $0x38] sm:$0xff]  }
  0x4c   : > { %1911 = vmatpush3.bf16.msra.mxu0 %v2272_v36  ;;  %2189 = vmatpush3.bf16.msra.mxu1 %v2272_v36  ;;  %v2285_v51 = vld [vmem:[%s2570_s17] ss:$8 sps:$4 sm:$0xff]   ;;  %v2291_v53 = vld [vmem:[%s2570_s17 + $0x14] ss:$8 sps:$4 sm:$0xff]   ;;  %v2295_v55 = vld [vmem:[%s2570_s17 + $0x10] ss:$8 sps:$4 sm:$0xff]  }
  0x4d   : > { %1912 = vmatprep.subr.bf16.mxu0 %v2273_v37  ;;  %2182 = vmatprep.subr.bf16.mxu1 %v2273_v37  ;;  %v2288_v52 = vld [vmem:[%s2570_s17 + $0x80] ss:$8 sps:$4 sm:$0xff]   ;;  %v2293_v54 = vld [vmem:[%s2570_s17 + $0x94] ss:$8 sps:$4 sm:$0xff]   ;;  %v2296_v56 = vld [vmem:[%s2570_s17 + $0x90] ss:$8 sps:$4 sm:$0xff]  }
  0x4e   : > { %922 = vmatprep.mubr.bf16.mxu1 %v2290_v45  ;;  %v2297_v57 = vld [vmem:[%s2570_s17 + $0x24] ss:$8 sps:$4 sm:$0xff]   ;;  %v2301_v59 = vld [vmem:[%s2570_s17 + $0x20] ss:$8 sps:$4 sm:$0xff]   ;;  %v2303_v61 = vld [vmem:[%s2570_s17 + $0x34] ss:$8 sps:$4 sm:$0xff]  }
  0x4f   : > { %v2299_v58 = vld [vmem:[%s2570_s17 + $0xa4] ss:$8 sps:$4 sm:$0xff]   ;;  %v2302_v60 = vld [vmem:[%s2570_s17 + $0xa0] ss:$8 sps:$4 sm:$0xff]   ;;  %v2305_v62 = vld [vmem:[%s2570_s17 + $0xb4] ss:$8 sps:$4 sm:$0xff]  }
  0x50   : > { %1913 = vmatpush3.bf16.msra.mxu0 %v2274_v38  ;;  %2190 = vmatpush3.bf16.msra.mxu1 %v2274_v38  ;;  %v2307_v63 = vld [vmem:[%s2570_s17 + $0x30] ss:$8 sps:$4 sm:$0xff]   ;;  %v2309_v1 = vld [vmem:[%s2570_s17 + $0x44] ss:$8 sps:$4 sm:$0xff]   ;;  %v2313_v3 = vld [vmem:[%s2570_s17 + $0x40] ss:$8 sps:$4 sm:$0xff]  }
  0x51   : > { %1914 = vmatprep.subr.bf16.mxu0 %v2275_v39  ;;  %2183 = vmatprep.subr.bf16.mxu1 %v2275_v39  ;;  %v2308_v0 = vld [vmem:[%s2570_s17 + $0xb0] ss:$8 sps:$4 sm:$0xff]   ;;  %v2311_v2 = vld [vmem:[%s2570_s17 + $0xc4] ss:$8 sps:$4 sm:$0xff]   ;;  %v2314_v4 = vld [vmem:[%s2570_s17 + $0xc0] ss:$8 sps:$4 sm:$0xff]  }
  0x52   : > { %v2315_v5 = vld [vmem:[%s2570_s17 + $0x54] ss:$8 sps:$4 sm:$0xff]   ;;  %v2319_v7 = vld [vmem:[%s2570_s17 + $0x50] ss:$8 sps:$4 sm:$0xff]   ;;  %v2321_v9 = vld [vmem:[%s2570_s17 + $0x64] ss:$8 sps:$4 sm:$0xff]  }
  0x53   : > { %v2317_v6 = vld [vmem:[%s2570_s17 + $0xd4] ss:$8 sps:$4 sm:$0xff]   ;;  %v2320_v8 = vld [vmem:[%s2570_s17 + $0xd0] ss:$8 sps:$4 sm:$0xff]   ;;  %v2323_v10 = vld [vmem:[%s2570_s17 + $0xe4] ss:$8 sps:$4 sm:$0xff]  }
  0x54   : > { %1915 = vmatpush3.bf16.msra.mxu0 %v2276_v40  ;;  %2191 = vmatpush3.bf16.msra.mxu1 %v2276_v40  ;;  %v2325_v11 = vld [vmem:[%s2570_s17 + $0x60] ss:$8 sps:$4 sm:$0xff]   ;;  %v2327_v13 = vld [vmem:[%s2570_s17 + $0x74] ss:$8 sps:$4 sm:$0xff]   ;;  %v2331_v15 = vld [vmem:[%s2570_s17 + $0x70] ss:$8 sps:$4 sm:$0xff]  }
  0x55   : > { %1916 = vmatprep.subr.bf16.mxu0 %v2277_v41  ;;  %2184 = vmatprep.subr.bf16.mxu1 %v2277_v41  ;;  %v2326_v12 = vld [vmem:[%s2570_s17 + $0xe0] ss:$8 sps:$4 sm:$0xff]   ;;  %v2329_v14 = vld [vmem:[%s2570_s17 + $0xf4] ss:$8 sps:$4 sm:$0xff]   ;;  %v2332_v16 = vld [vmem:[%s2570_s17 + $0xf0] ss:$8 sps:$4 sm:$0xff]  }
  0x56   : > { %v474_v19 = vld [vmem:[#allocation2] sm:$0xff]  ;;  %v475_v27 = vld [vmem:[#allocation2 + $0x8] sm:$0xff]  ;;  %v476_v39 = vld [vmem:[#allocation2 + $0x10] sm:$0xff] }
  0x57   : > { %v490_v21 = vld [vmem:[#allocation2 + $0x80] sm:$0xff]  ;;  %v491_v29 = vld [vmem:[#allocation2 + $0x88] sm:$0xff]  ;;  %v492_v41 = vld [vmem:[#allocation2 + $0x90] sm:$0xff] }
  0x58   : > { %1917 = vmatpush3.bf16.msra.mxu0 %v2278_v42  ;;  %2192 = vmatpush3.bf16.msra.mxu1 %v2278_v42 }
  0x59   : > { %1918 = vmatprep.subr.bf16.mxu0 %v2279_v43  ;;  %2185 = vmatprep.subr.bf16.mxu1 %v2279_v43 }
  0x5c   : > { %1919 = vmatpush3.bf16.msra.mxu0 %v2280_v46  ;;  %2193 = vmatpush3.bf16.msra.mxu1 %v2280_v46 }
  0x5d   : > { %1920 = vmatprep.subr.bf16.mxu0 %v2281_v47  ;;  %2186 = vmatprep.subr.bf16.mxu1 %v2281_v47  ;;  %v477_v47 = vld [vmem:[#allocation2 + $0x18] sm:$0xff] }
  0x60   : > { %1921 = vmatpush3.bf16.msra.mxu0 %v2282_v48  ;;  %2194 = vmatpush3.bf16.msra.mxu1 %v2282_v48 }
  0x61   : > { %1922 = vmatprep.subr.bf16.mxu0 %v2283_v49  ;;  %2187 = vmatprep.subr.bf16.mxu1 %v2283_v49  ;;  %v493_v49 = vld [vmem:[#allocation2 + $0x98] sm:$0xff] }
  0x64   : > { %1923 = vmatpush3.bf16.msra.mxu0 %v2284_v50  ;;  %2195 = vmatpush3.bf16.msra.mxu1 %v2284_v50 }
  0x67   : > { %859 = vmatmul.mubr.bf16.vlgmr.msra.gmra.mrb[0].mxu0 %v2285_v51  ;;  %923 = vmatmul.mubr.bf16.vlgmr.msra.gmra.mrb[0].mxu1 %v2288_v52 }
  0x68   : > { %866 = vmatprep.mubr.bf16.mxu0 %v2291_v53  ;;  %930 = vmatprep.mubr.bf16.mxu1 %v2293_v54 }
  0x6f   : > { %867 = vmatmul.mubr.bf16.gmra.mrb[4].mxu0 %v2295_v55  ;;  %931 = vmatmul.mubr.bf16.gmra.mrb[4].mxu1 %v2296_v56 }
  0x70   : > { %874 = vmatprep.mubr.bf16.mxu0 %v2297_v57  ;;  %938 = vmatprep.mubr.bf16.mxu1 %v2299_v58 }
  0x77   : > { %875 = vmatmul.mubr.bf16.gmra.mrb[8].mxu0 %v2301_v59  ;;  %939 = vmatmul.mubr.bf16.gmra.mrb[8].mxu1 %v2302_v60  ;;  %v478_v59 = vld [vmem:[#allocation2 + $0x20] sm:$0xff] }
  0x78   : > { %882 = vmatprep.mubr.bf16.mxu0 %v2303_v61  ;;  %946 = vmatprep.mubr.bf16.mxu1 %v2305_v62  ;;  %v494_v61 = vld [vmem:[#allocation2 + $0xa0] sm:$0xff] }
  0x7f   : > { %883 = vmatmul.mubr.bf16.gmra.mrb[12].mxu0 %v2307_v63  ;;  %947 = vmatmul.mubr.bf16.gmra.mrb[12].mxu1 %v2308_v0 }
  0x80   : > { %890 = vmatprep.mubr.bf16.mxu0 %v2309_v1  ;;  %954 = vmatprep.mubr.bf16.mxu1 %v2311_v2 }
  0x87   : > { %891 = vmatmul.mubr.bf16.gmra.mrb[16].mxu0 %v2313_v3  ;;  %955 = vmatmul.mubr.bf16.gmra.mrb[16].mxu1 %v2314_v4  ;;  %v479_v3 = vld [vmem:[#allocation2 + $0x28] sm:$0xff] }
  0x88   : > { %898 = vmatprep.mubr.bf16.mxu0 %v2315_v5  ;;  %962 = vmatprep.mubr.bf16.mxu1 %v2317_v6  ;;  %v495_v5 = vld [vmem:[#allocation2 + $0xa8] sm:$0xff] }
  0x8f   : > { %899 = vmatmul.mubr.bf16.gmra.mrb[20].mxu0 %v2319_v7  ;;  %963 = vmatmul.mubr.bf16.gmra.mrb[20].mxu1 %v2320_v8 }
  0x90   : > { %906 = vmatprep.mubr.bf16.mxu0 %v2321_v9  ;;  %970 = vmatprep.mubr.bf16.mxu1 %v2323_v10 }
  0x97   : > { %907 = vmatmul.mubr.bf16.gmra.mrb[24].mxu0 %v2325_v11  ;;  %971 = vmatmul.mubr.bf16.gmra.mrb[24].mxu1 %v2326_v12 }
  0x98   : > { %914 = vmatprep.mubr.bf16.mxu0 %v2327_v13  ;;  %978 = vmatprep.mubr.bf16.mxu1 %v2329_v14 }
  0x9f   : > { %915 = vmatmul.mubr.bf16.gmra.mrb[28].mxu0 %v2331_v15  ;;  %979 = vmatmul.mubr.bf16.gmra.mrb[28].mxu1 %v2332_v16  ;;  %v480_v15 = vld [vmem:[#allocation2 + $0x30] sm:$0xff] }
 0x13a   : > { %v1924_v17 = vpop.f32.mrb[0].mxu0  ;;  %v1972_v18 = vpop.f32.mrb[0].mxu1 }
 0x13b   : > { %v1925_v20 = vpop.f32.mrb[1].mxu0  ;;  %v1973_v22 = vpop.f32.mrb[1].mxu1 }
 0x13c   : > { %v1926_v23 = vadd.f32 %v1925_v20, %v1924_v17  ;;  %v1974_v24 = vadd.f32 %v1973_v22, %v1972_v18  ;;  %v1927_v25 = vpop.f32.mrb[2].mxu0  ;;  %v1975_v26 = vpop.f32.mrb[2].mxu1  ;;  %v496_v17 = vld [vmem:[#allocation2 + $0xb0] sm:$0xff] }
 0x13d   : > { %v1928_v28 = vpop.f32.mrb[3].mxu0  ;;  %v1976_v30 = vpop.f32.mrb[3].mxu1 }
 0x13e   : > { %v987_v31 = vadd.f32 %v1926_v23, %v474_v19  ;;  %v1003_v32 = vadd.f32 %v1974_v24, %v490_v21  ;;  %v1929_v33 = vadd.f32 %v1928_v28, %v1927_v25  ;;  %v1977_v34 = vadd.f32 %v1976_v30, %v1975_v26  ;;  %v481_v23 = vld [vmem:[#allocation2 + $0x38] sm:$0xff] }
 0x13f   : > { %v497_v25 = vld [vmem:[#allocation2 + $0xb8] sm:$0xff] }
 0x140   : > { %1019 = vst [vmem:[#allocation2] sm:$0xff] %v987_v31  ;;  %1035 = vst [vmem:[#allocation2 + $0x80] sm:$0xff] %v1003_v32  ;;  %v988_v35 = vadd.f32 %v1929_v33, %v475_v27  ;;  %v1004_v36 = vadd.f32 %v1977_v34, %v491_v29 }
 0x142   : > { %1020 = vst [vmem:[#allocation2 + $0x8] sm:$0xff] %v988_v35  ;;  %1036 = vst [vmem:[#allocation2 + $0x88] sm:$0xff] %v1004_v36  ;;  %v1930_v37 = vpop.f32.mrb[4].mxu0  ;;  %v1978_v38 = vpop.f32.mrb[4].mxu1  ;;  %v482_v35 = vld [vmem:[#allocation2 + $0x40] sm:$0xff] }
 0x143   : > { %v1931_v40 = vpop.f32.mrb[5].mxu0  ;;  %v1979_v42 = vpop.f32.mrb[5].mxu1 }
 0x144   : > { %v1932_v43 = vadd.f32 %v1931_v40, %v1930_v37  ;;  %v1980_v44 = vadd.f32 %v1979_v42, %v1978_v38  ;;  %v1933_v45 = vpop.f32.mrb[6].mxu0  ;;  %v1981_v46 = vpop.f32.mrb[6].mxu1  ;;  %v498_v37 = vld [vmem:[#allocation2 + $0xc0] sm:$0xff] }
 0x145   : > { %v1934_v48 = vpop.f32.mrb[7].mxu0  ;;  %v1982_v50 = vpop.f32.mrb[7].mxu1 }
 0x146   : > { %v989_v51 = vadd.f32 %v1932_v43, %v476_v39  ;;  %v1005_v52 = vadd.f32 %v1980_v44, %v492_v41  ;;  %v1935_v53 = vadd.f32 %v1934_v48, %v1933_v45  ;;  %v1983_v54 = vadd.f32 %v1982_v50, %v1981_v46  ;;  %v483_v43 = vld [vmem:[#allocation2 + $0x48] sm:$0xff] }
 0x147   : > { %v499_v45 = vld [vmem:[#allocation2 + $0xc8] sm:$0xff] }
 0x148   : > { %1021 = vst [vmem:[#allocation2 + $0x10] sm:$0xff] %v989_v51  ;;  %1037 = vst [vmem:[#allocation2 + $0x90] sm:$0xff] %v1005_v52  ;;  %v990_v55 = vadd.f32 %v1935_v53, %v477_v47  ;;  %v1006_v56 = vadd.f32 %v1983_v54, %v493_v49 }
 0x14a   : > { %1022 = vst [vmem:[#allocation2 + $0x18] sm:$0xff] %v990_v55  ;;  %1038 = vst [vmem:[#allocation2 + $0x98] sm:$0xff] %v1006_v56  ;;  %v1936_v57 = vpop.f32.mrb[8].mxu0  ;;  %v1984_v58 = vpop.f32.mrb[8].mxu1  ;;  %v484_v55 = vld [vmem:[#allocation2 + $0x50] sm:$0xff] }
 0x14b   : > { %v1937_v60 = vpop.f32.mrb[9].mxu0  ;;  %v1985_v62 = vpop.f32.mrb[9].mxu1 }
 0x14c   : > { %v1938_v63 = vadd.f32 %v1937_v60, %v1936_v57  ;;  %v1986_v0 = vadd.f32 %v1985_v62, %v1984_v58  ;;  %v1939_v1 = vpop.f32.mrb[10].mxu0  ;;  %v1987_v2 = vpop.f32.mrb[10].mxu1  ;;  %v500_v57 = vld [vmem:[#allocation2 + $0xd0] sm:$0xff] }
 0x14d   : > { %v1940_v4 = vpop.f32.mrb[11].mxu0  ;;  %v1988_v6 = vpop.f32.mrb[11].mxu1 }
 0x14e   : > { %v991_v7 = vadd.f32 %v1938_v63, %v478_v59  ;;  %v1007_v8 = vadd.f32 %v1986_v0, %v494_v61  ;;  %v1941_v9 = vadd.f32 %v1940_v4, %v1939_v1  ;;  %v1989_v10 = vadd.f32 %v1988_v6, %v1987_v2  ;;  %v485_v63 = vld [vmem:[#allocation2 + $0x58] sm:$0xff] }
 0x14f   : > { %v501_v1 = vld [vmem:[#allocation2 + $0xd8] sm:$0xff] }
 0x150   : > { %1023 = vst [vmem:[#allocation2 + $0x20] sm:$0xff] %v991_v7  ;;  %1039 = vst [vmem:[#allocation2 + $0xa0] sm:$0xff] %v1007_v8  ;;  %v992_v11 = vadd.f32 %v1941_v9, %v479_v3  ;;  %v1008_v12 = vadd.f32 %v1989_v10, %v495_v5 }
 0x152   : > { %1024 = vst [vmem:[#allocation2 + $0x28] sm:$0xff] %v992_v11  ;;  %1040 = vst [vmem:[#allocation2 + $0xa8] sm:$0xff] %v1008_v12  ;;  %v1942_v13 = vpop.f32.mrb[12].mxu0  ;;  %v1990_v14 = vpop.f32.mrb[12].mxu1  ;;  %v486_v11 = vld [vmem:[#allocation2 + $0x60] sm:$0xff] }
 0x153   : > { %v1943_v16 = vpop.f32.mrb[13].mxu0  ;;  %v1991_v18 = vpop.f32.mrb[13].mxu1 }
 0x154   : > { %v1944_v19 = vadd.f32 %v1943_v16, %v1942_v13  ;;  %v1992_v20 = vadd.f32 %v1991_v18, %v1990_v14  ;;  %v1945_v21 = vpop.f32.mrb[14].mxu0  ;;  %v1993_v22 = vpop.f32.mrb[14].mxu1  ;;  %v502_v13 = vld [vmem:[#allocation2 + $0xe0] sm:$0xff] }
 0x155   : > { %v1946_v24 = vpop.f32.mrb[15].mxu0  ;;  %v1994_v26 = vpop.f32.mrb[15].mxu1 }
 0x156   : > { %v993_v27 = vadd.f32 %v1944_v19, %v480_v15  ;;  %v1009_v28 = vadd.f32 %v1992_v20, %v496_v17  ;;  %v1947_v29 = vadd.f32 %v1946_v24, %v1945_v21  ;;  %v1995_v30 = vadd.f32 %v1994_v26, %v1993_v22  ;;  %v487_v19 = vld [vmem:[#allocation2 + $0x68] sm:$0xff] }
 0x157   : > { %v503_v21 = vld [vmem:[#allocation2 + $0xe8] sm:$0xff] }
 0x158   : > { %1025 = vst [vmem:[#allocation2 + $0x30] sm:$0xff] %v993_v27  ;;  %1041 = vst [vmem:[#allocation2 + $0xb0] sm:$0xff] %v1009_v28  ;;  %v994_v31 = vadd.f32 %v1947_v29, %v481_v23  ;;  %v1010_v32 = vadd.f32 %v1995_v30, %v497_v25 }
 0x15a   : > { %1026 = vst [vmem:[#allocation2 + $0x38] sm:$0xff] %v994_v31  ;;  %1042 = vst [vmem:[#allocation2 + $0xb8] sm:$0xff] %v1010_v32  ;;  %v1948_v33 = vpop.f32.mrb[16].mxu0  ;;  %v1996_v34 = vpop.f32.mrb[16].mxu1  ;;  %v488_v31 = vld [vmem:[#allocation2 + $0x70] sm:$0xff] }
 0x15b   : > { %v1949_v36 = vpop.f32.mrb[17].mxu0  ;;  %v1997_v38 = vpop.f32.mrb[17].mxu1 }
 0x15c   : > { %v1950_v39 = vadd.f32 %v1949_v36, %v1948_v33  ;;  %v1998_v40 = vadd.f32 %v1997_v38, %v1996_v34  ;;  %v1951_v41 = vpop.f32.mrb[18].mxu0  ;;  %v1999_v42 = vpop.f32.mrb[18].mxu1  ;;  %v504_v33 = vld [vmem:[#allocation2 + $0xf0] sm:$0xff] }
 0x15d   : > { %v1952_v44 = vpop.f32.mrb[19].mxu0  ;;  %v2000_v46 = vpop.f32.mrb[19].mxu1 }
 0x15e   : > { %v995_v47 = vadd.f32 %v1950_v39, %v482_v35  ;;  %v1011_v48 = vadd.f32 %v1998_v40, %v498_v37  ;;  %v1953_v49 = vadd.f32 %v1952_v44, %v1951_v41  ;;  %v2001_v50 = vadd.f32 %v2000_v46, %v1999_v42  ;;  %v489_v39 = vld [vmem:[#allocation2 + $0x78] sm:$0xff] }
 0x15f   : > { %v505_v41 = vld [vmem:[#allocation2 + $0xf8] sm:$0xff] }
 0x160   : > { %1027 = vst [vmem:[#allocation2 + $0x40] sm:$0xff] %v995_v47  ;;  %1043 = vst [vmem:[#allocation2 + $0xc0] sm:$0xff] %v1011_v48  ;;  %v996_v51 = vadd.f32 %v1953_v49, %v483_v43  ;;  %v1012_v52 = vadd.f32 %v2001_v50, %v499_v45  ;;  %v1087_v49 = vld [vmem:[%s2820_s2] sm:$0xff] (!%p1744_p0)  ;;  %v1088_v50 = vld [vmem:[%s2820_s2 + $0x8] sm:$0xff] (!%p1744_p0) }
 0x162   : > { %1028 = vst [vmem:[#allocation2 + $0x48] sm:$0xff] %v996_v51  ;;  %1044 = vst [vmem:[#allocation2 + $0xc8] sm:$0xff] %v1012_v52  ;;  %v1954_v53 = vpop.f32.mrb[20].mxu0  ;;  %v2002_v54 = vpop.f32.mrb[20].mxu1  ;;  %v1089_v51 = vld [vmem:[%s2820_s2 + $0x10] sm:$0xff] (!%p1744_p0)  ;;  %v2148_v52 = vpack.c.bf16 (!%p1744_p0), %v1088_v50, %v1087_v49 }
 0x163   : > { %v1955_v56 = vpop.f32.mrb[21].mxu0  ;;  %v2003_v58 = vpop.f32.mrb[21].mxu1 }
 0x164   : > { %v1956_v59 = vadd.f32 %v1955_v56, %v1954_v53  ;;  %v2004_v60 = vadd.f32 %v2003_v58, %v2002_v54  ;;  %v1957_v61 = vpop.f32.mrb[22].mxu0  ;;  %v2005_v62 = vpop.f32.mrb[22].mxu1  ;;  %v1090_v53 = vld [vmem:[%s2820_s2 + $0x18] sm:$0xff] (!%p1744_p0)  ;;  %v1092_v56 = vld [vmem:[%s2820_s2 + $0x28] sm:$0xff] (!%p1744_p0)  ;;  %2149 = vmatprep.subr.bf16.mxu0 (!%p1744_p0), %v2148_v52  ;;  %2196 = vmatprep.subr.bf16.mxu1 (!%p1744_p0), %v2148_v52  ;;  %v1055_v58 = vld [vmem:[#allocation2] sm:$0xff] (!%p1744_p0) }
 0x165   : > { %v1958_v0 = vpop.f32.mrb[23].mxu0  ;;  %v2006_v2 = vpop.f32.mrb[23].mxu1  ;;  %v2152_v54 = vpack.c.bf16 (!%p1744_p0), %v1090_v53, %v1089_v51  ;;  %2151 = vmatpush3.bf16.msra.mxu0 (!%p1744_p0), %v2148_v52  ;;  %2204 = vmatpush3.bf16.msra.mxu1 (!%p1744_p0), %v2148_v52 }
 0x166   : > { %v997_v3 = vadd.f32 %v1956_v59, %v484_v55  ;;  %v1013_v4 = vadd.f32 %v2004_v60, %v500_v57  ;;  %v1959_v5 = vadd.f32 %v1958_v0, %v1957_v61  ;;  %v2007_v6 = vadd.f32 %v2006_v2, %v2005_v62  ;;  %v1091_v55 = vld [vmem:[%s2820_s2 + $0x20] sm:$0xff] (!%p1744_p0)  ;;  %v1093_v59 = vld [vmem:[%s2820_s2 + $0x30] sm:$0xff] (!%p1744_p0)  ;;  %v1094_v60 = vld [vmem:[%s2820_s2 + $0x38] sm:$0xff] (!%p1744_p0)  ;;  %2100 = vmatprep.mubr.f32.mxu0 (!%p1744_p0), %v1055_v58 }
 0x167   : > { %2153 = vmatprep.subr.bf16.mxu0 (!%p1744_p0), %v2152_v54  ;;  %v2156_v57 = vpack.c.bf16 (!%p1744_p0), %v1092_v56, %v1091_v55  ;;  %2197 = vmatprep.subr.bf16.mxu1 (!%p1744_p0), %v2152_v54  ;;  %v2160_v61 = vpack.c.bf16 (!%p1744_p0), %v1094_v60, %v1093_v59  ;;  %v1095_v62 = vld [vmem:[%s2820_s2 + $0x40] sm:$0xff] (!%p1744_p0)  ;;  %v1097_v2 = vld [vmem:[%s2820_s2 + $0x50] sm:$0xff] (!%p1744_p0) }
 0x168   : > { %1029 = vst [vmem:[#allocation2 + $0x50] sm:$0xff] %v997_v3  ;;  %1045 = vst [vmem:[#allocation2 + $0xd0] sm:$0xff] %v1013_v4  ;;  %v998_v7 = vadd.f32 %v1959_v5, %v485_v63  ;;  %v1014_v8 = vadd.f32 %v2007_v6, %v501_v1  ;;  %v1096_v63 = vld [vmem:[%s2820_s2 + $0x48] sm:$0xff] (!%p1744_p0)  ;;  %v1071_v0 = vld [vmem:[#allocation2 + $0x80] sm:$0xff] (!%p1744_p0) }
 0x169   : > { %2155 = vmatpush3.bf16.msra.mxu0 (!%p1744_p0), %v2152_v54  ;;  %2205 = vmatpush3.bf16.msra.mxu1 (!%p1744_p0), %v2152_v54  ;;  %v2164_v1 = vpack.c.bf16 (!%p1744_p0), %v1096_v63, %v1095_v62  ;;  %v1098_v3 = vld [vmem:[%s2820_s2 + $0x58] sm:$0xff] (!%p1744_p0)  ;;  %v1099_v5 = vld [vmem:[%s2820_s2 + $0x60] sm:$0xff] (!%p1744_p0)  ;;  %v1100_v6 = vld [vmem:[%s2820_s2 + $0x68] sm:$0xff] (!%p1744_p0) }
 0x16a   : > { %1030 = vst [vmem:[#allocation2 + $0x58] sm:$0xff] %v998_v7  ;;  %1046 = vst [vmem:[#allocation2 + $0xd8] sm:$0xff] %v1014_v8  ;;  %v1960_v9 = vpop.f32.mrb[24].mxu0  ;;  %v2008_v10 = vpop.f32.mrb[24].mxu1  ;;  %2157 = vmatprep.subr.bf16.mxu0 (!%p1744_p0), %v2156_v57  ;;  %2198 = vmatprep.subr.bf16.mxu1 (!%p1744_p0), %v2156_v57  ;;  %v2168_v4 = vpack.c.bf16 (!%p1744_p0), %v1098_v3, %v1097_v2  ;;  %v2172_v7 = vpack.c.bf16 (!%p1744_p0), %v1100_v6, %v1099_v5  ;;  %v1101_v8 = vld [vmem:[%s2820_s2 + $0x70] sm:$0xff] (!%p1744_p0) }
 0x16b   : > { %v1961_v12 = vpop.f32.mrb[25].mxu0  ;;  %v2009_v14 = vpop.f32.mrb[25].mxu1  ;;  %2124 = vmatprep.mubr.f32.mxu1 (!%p1744_p0), %v1071_v0 }
 0x16c   : > { %v1962_v15 = vadd.f32 %v1961_v12, %v1960_v9  ;;  %v2010_v16 = vadd.f32 %v2009_v14, %v2008_v10  ;;  %v1963_v17 = vpop.f32.mrb[26].mxu0  ;;  %v2011_v18 = vpop.f32.mrb[26].mxu1  ;;  %v1102_v9 = vld [vmem:[%s2820_s2 + $0x78] sm:$0xff] (!%p1744_p0)  ;;  %v1072_v12 = vld [vmem:[#allocation2 + $0x88] sm:$0xff] (!%p1744_p0)  ;;  %v1073_v14 = vld [vmem:[#allocation2 + $0x90] sm:$0xff] (!%p1744_p0) }
 0x16d   : > { %v1964_v20 = vpop.f32.mrb[27].mxu0  ;;  %v2012_v22 = vpop.f32.mrb[27].mxu1  ;;  %2159 = vmatpush3.bf16.msra.mxu0 (!%p1744_p0), %v2156_v57  ;;  %2206 = vmatpush3.bf16.msra.mxu1 (!%p1744_p0), %v2156_v57  ;;  %v2176_v10 = vpack.c.bf16 (!%p1744_p0), %v1102_v9, %v1101_v8 }
 0x16e   : > { %v999_v23 = vadd.f32 %v1962_v15, %v486_v11  ;;  %v1015_v24 = vadd.f32 %v2010_v16, %v502_v13  ;;  %v1965_v25 = vadd.f32 %v1964_v20, %v1963_v17  ;;  %v2013_v26 = vadd.f32 %v2012_v22, %v2011_v18  ;;  %2161 = vmatprep.subr.bf16.mxu0 (!%p1744_p0), %v2160_v61  ;;  %v1056_v11 = vld [vmem:[#allocation2 + $0x8] sm:$0xff] (!%p1744_p0)  ;;  %v1057_v13 = vld [vmem:[#allocation2 + $0x10] sm:$0xff] (!%p1744_p0)  ;;  %v1058_v15 = vld [vmem:[#allocation2 + $0x18] sm:$0xff] (!%p1744_p0) }
 0x16f   : > { %2199 = vmatprep.subr.bf16.mxu1 (!%p1744_p0), %v2160_v61  ;;  %v1074_v16 = vld [vmem:[#allocation2 + $0x98] sm:$0xff] (!%p1744_p0)  ;;  %v1059_v17 = vld [vmem:[#allocation2 + $0x20] sm:$0xff] (!%p1744_p0)  ;;  %v1076_v20 = vld [vmem:[#allocation2 + $0xa8] sm:$0xff] (!%p1744_p0) }
 0x170   : > { %1031 = vst [vmem:[#allocation2 + $0x60] sm:$0xff] %v999_v23  ;;  %1047 = vst [vmem:[#allocation2 + $0xe0] sm:$0xff] %v1015_v24  ;;  %v1000_v27 = vadd.f32 %v1965_v25, %v487_v19  ;;  %v1016_v28 = vadd.f32 %v2013_v26, %v503_v21  ;;  %v1075_v18 = vld [vmem:[#allocation2 + $0xa0] sm:$0xff] (!%p1744_p0)  ;;  %v1060_v19 = vld [vmem:[#allocation2 + $0x28] sm:$0xff] (!%p1744_p0) }
 0x171   : > { %2163 = vmatpush3.bf16.msra.mxu0 (!%p1744_p0), %v2160_v61  ;;  %2207 = vmatpush3.bf16.msra.mxu1 (!%p1744_p0), %v2160_v61  ;;  %v1061_v21 = vld [vmem:[#allocation2 + $0x30] sm:$0xff] (!%p1744_p0)  ;;  %v1062_v23 = vld [vmem:[#allocation2 + $0x38] sm:$0xff] (!%p1744_p0)  ;;  %v1063_v25 = vld [vmem:[#allocation2 + $0x40] sm:$0xff] (!%p1744_p0) }
 0x172   : > { %1032 = vst [vmem:[#allocation2 + $0x68] sm:$0xff] %v1000_v27  ;;  %1048 = vst [vmem:[#allocation2 + $0xe8] sm:$0xff] %v1016_v28  ;;  %v1966_v29 = vpop.f32.mrb[28].mxu0  ;;  %v2014_v30 = vpop.f32.mrb[28].mxu1  ;;  %2165 = vmatprep.subr.bf16.mxu0 (!%p1744_p0), %v2164_v1  ;;  %2200 = vmatprep.subr.bf16.mxu1 (!%p1744_p0), %v2164_v1  ;;  %v1077_v22 = vld [vmem:[#allocation2 + $0xb0] sm:$0xff] (!%p1744_p0)  ;;  %v1078_v24 = vld [vmem:[#allocation2 + $0xb8] sm:$0xff] (!%p1744_p0) }
 0x173   : > { %v1967_v32 = vpop.f32.mrb[29].mxu0  ;;  %v2015_v34 = vpop.f32.mrb[29].mxu1  ;;  %v1079_v26 = vld [vmem:[#allocation2 + $0xc0] sm:$0xff] (!%p1744_p0)  ;;  %v1064_v27 = vld [vmem:[#allocation2 + $0x48] sm:$0xff] (!%p1744_p0) }
 0x174   : > { %v1968_v35 = vadd.f32 %v1967_v32, %v1966_v29  ;;  %v2016_v36 = vadd.f32 %v2015_v34, %v2014_v30  ;;  %v1969_v37 = vpop.f32.mrb[30].mxu0  ;;  %v2017_v38 = vpop.f32.mrb[30].mxu1  ;;  %1054 = sbr.rel (%p1744_p0) target bundleno = 670 (0x29e), region = 82  ;;  %v1080_v28 = vld [vmem:[#allocation2 + $0xc8] sm:$0xff] (!%p1744_p0)  ;;  %v1065_v29 = vld [vmem:[#allocation2 + $0x50] sm:$0xff] (!%p1744_p0)  ;;  %v1082_v32 = vld [vmem:[#allocation2 + $0xd8] sm:$0xff] (!%p1744_p0) }
 0x175   : > { %v1970_v40 = vpop.f32.mrb[31].mxu0  ;;  %v2018_v42 = vpop.f32.mrb[31].mxu1  ;;  %2167 = vmatpush3.bf16.msra.mxu0 (!%p1744_p0), %v2164_v1  ;;  %2208 = vmatpush3.bf16.msra.mxu1 (!%p1744_p0), %v2164_v1  ;;  %v1081_v30 = vld [vmem:[#allocation2 + $0xd0] sm:$0xff] (!%p1744_p0) }
 0x176   : > { %v1001_v43 = vadd.f32 %v1968_v35, %v488_v31  ;;  %v1017_v44 = vadd.f32 %v2016_v36, %v504_v33  ;;  %v1971_v45 = vadd.f32 %v1970_v40, %v1969_v37  ;;  %v2019_v46 = vadd.f32 %v2018_v42, %v2017_v38  ;;  %2169 = vmatprep.subr.bf16.mxu0 (!%p1744_p0), %v2168_v4  ;;  %v1066_v31 = vld [vmem:[#allocation2 + $0x58] sm:$0xff] (!%p1744_p0) }
 0x177   : > { %2201 = vmatprep.subr.bf16.mxu1 (!%p1744_p0), %v2168_v4  ;;  %v1067_v33 = vld [vmem:[#allocation2 + $0x60] sm:$0xff] (!%p1744_p0) }
 0x178   : > { %1033 = vst [vmem:[#allocation2 + $0x70] sm:$0xff] %v1001_v43  ;;  %1049 = vst [vmem:[#allocation2 + $0xf0] sm:$0xff] %v1017_v44  ;;  %v1002_v47 = vadd.f32 %v1971_v45, %v489_v39  ;;  %v1018_v48 = vadd.f32 %v2019_v46, %v505_v41  ;;  %v1083_v34 = vld [vmem:[#allocation2 + $0xe0] sm:$0xff] (!%p1744_p0) }
 0x179   : > { %2171 = vmatpush3.bf16.msra.mxu0 (!%p1744_p0), %v2168_v4  ;;  %2209 = vmatpush3.bf16.msra.mxu1 (!%p1744_p0), %v2168_v4  ;;  %v1068_v35 = vld [vmem:[#allocation2 + $0x68] sm:$0xff] (!%p1744_p0)  ;;  %v2673_v41 = vld [vmem:[%s2821_s3] ss:$0 sm:$0xff] (!%p1744_p0) }
 0x17a   : > { %1034 = vst [vmem:[#allocation2 + $0x78] sm:$0xff] %v1002_v47  ;;  %1050 = vst [vmem:[#allocation2 + $0xf8] sm:$0xff] %v1018_v48  ;;  %2173 = vmatprep.subr.bf16.mxu0 (!%p1744_p0), %v2172_v7  ;;  %2202 = vmatprep.subr.bf16.mxu1 (!%p1744_p0), %v2172_v7  ;;  %v1084_v36 = vld [vmem:[#allocation2 + $0xe8] sm:$0xff] (!%p1744_p0) }
 0x17d   : > { %2175 = vmatpush3.bf16.msra.mxu0 %v2172_v7  ;;  %2210 = vmatpush3.bf16.msra.mxu1 %v2172_v7 }
 0x17e   : > { %2177 = vmatprep.subr.bf16.mxu0 %v2176_v10  ;;  %2203 = vmatprep.subr.bf16.mxu1 %v2176_v10 }
 0x17f   : > { %v1069_v37 = vld [vmem:[#allocation2 + $0x70] sm:$0xff] }
 0x180   : > { %v1085_v38 = vld [vmem:[#allocation2 + $0xf0] sm:$0xff] }
 0x181   : > { %2179 = vmatpush3.bf16.msra.mxu0 %v2176_v10  ;;  %2211 = vmatpush3.bf16.msra.mxu1 %v2176_v10  ;;  %v1070_v39 = vld [vmem:[#allocation2 + $0x78] sm:$0xff] }
 0x182   : > { %v1086_v40 = vld [vmem:[#allocation2 + $0xf8] sm:$0xff] }
 0x184   : > { %2101 = vmatmul.mubr.f32.vlgmr.msra.gmra.mrb[0].mxu0 %v1056_v11  ;;  %2125 = vmatmul.mubr.f32.vlgmr.msra.gmra.mrb[0].mxu1 %v1072_v12 }
 0x185   : > { %2103 = vmatprep.mubr.f32.mxu0 %v1057_v13  ;;  %2127 = vmatprep.mubr.f32.mxu1 %v1073_v14 }
 0x188   : > { %2104 = vmatmul.mubr.f32.gmra.mrb[2].mxu0 %v1058_v15  ;;  %2128 = vmatmul.mubr.f32.gmra.mrb[2].mxu1 %v1074_v16 }
 0x189   : > { %2106 = vmatprep.mubr.f32.mxu0 %v1059_v17  ;;  %2130 = vmatprep.mubr.f32.mxu1 %v1075_v18 }
 0x18c   : > { %2107 = vmatmul.mubr.f32.gmra.mrb[4].mxu0 %v1060_v19  ;;  %2131 = vmatmul.mubr.f32.gmra.mrb[4].mxu1 %v1076_v20 }
 0x18d   : > { %2109 = vmatprep.mubr.f32.mxu0 %v1061_v21  ;;  %2133 = vmatprep.mubr.f32.mxu1 %v1077_v22 }
 0x190   : > { %2110 = vmatmul.mubr.f32.gmra.mrb[6].mxu0 %v1062_v23  ;;  %2134 = vmatmul.mubr.f32.gmra.mrb[6].mxu1 %v1078_v24 }
 0x191   : > { %2112 = vmatprep.mubr.f32.mxu0 %v1063_v25  ;;  %2136 = vmatprep.mubr.f32.mxu1 %v1079_v26 }
 0x194   : > { %2113 = vmatmul.mubr.f32.gmra.mrb[8].mxu0 %v1064_v27  ;;  %2137 = vmatmul.mubr.f32.gmra.mrb[8].mxu1 %v1080_v28 }
 0x195   : > { %2115 = vmatprep.mubr.f32.mxu0 %v1065_v29  ;;  %2139 = vmatprep.mubr.f32.mxu1 %v1081_v30 }
 0x198   : > { %2116 = vmatmul.mubr.f32.gmra.mrb[10].mxu0 %v1066_v31  ;;  %2140 = vmatmul.mubr.f32.gmra.mrb[10].mxu1 %v1082_v32 }
 0x199   : > { %2118 = vmatprep.mubr.f32.mxu0 %v1067_v33  ;;  %2142 = vmatprep.mubr.f32.mxu1 %v1083_v34 }
 0x19c   : > { %2119 = vmatmul.mubr.f32.gmra.mrb[12].mxu0 %v1068_v35  ;;  %2143 = vmatmul.mubr.f32.gmra.mrb[12].mxu1 %v1084_v36 }
 0x19d   : > { %2121 = vmatprep.mubr.f32.mxu0 %v1069_v37  ;;  %2145 = vmatprep.mubr.f32.mxu1 %v1085_v38 }
 0x1a0   : > { %2122 = vmatmul.mubr.f32.gmra.mrb[14].mxu0 %v1070_v39  ;;  %2146 = vmatmul.mubr.f32.gmra.mrb[14].mxu1 %v1086_v40 }
 0x257   : > { %v2102_v42 = vpop.f32.mrb[0].mxu0  ;;  %v2126_v43 = vpop.f32.mrb[0].mxu1 }
 0x258   : > { %v1182_v44 = vadd.f32 %v2102_v42, %v2673_v41  ;;  %v1176_v45 = vpop.f32.mrb[1].mxu0  ;;  %v2677_v46 = vadd.f32 %v2126_v43, %v2673_v41  ;;  %v1256_v47 = vpop.f32.mrb[1].mxu1 }
 0x259   : > { %v1177_v48 = vadd.f32 %v2673_v41, %v1176_v45  ;;  %v2681_v49 = vadd.f32 %v2673_v41, %v1256_v47 }
 0x25a   : > { %v1336_v50 = vmax.f32 %v1182_v44, 0.0  ;;  %v1352_v51 = vmax.f32 %v2677_v46, 0.0 }
 0x25b   : > { %v1335_v52 = vmax.f32 %v1177_v48, 0.0  ;;  %v2105_v53 = vpop.f32.mrb[2].mxu0  ;;  %v1351_v54 = vmax.f32 %v2681_v49, 0.0  ;;  %v2129_v55 = vpop.f32.mrb[2].mxu1 }
 0x25c   : > { %v1192_v56 = vadd.f32 %v2105_v53, %v2673_v41  ;;  %v1186_v57 = vpop.f32.mrb[3].mxu0  ;;  %v2687_v58 = vadd.f32 %v2129_v55, %v2673_v41  ;;  %v1266_v59 = vpop.f32.mrb[3].mxu1 }
 0x25d   : > { %v1816_v60 = vpack.c.bf16 %v1336_v50, %v1335_v52  ;;  %v1527_v61 = vadd.f32 %v1336_v50, %v1335_v52  ;;  %v1187_v62 = vadd.f32 %v2673_v41, %v1186_v57  ;;  %v1856_v63 = vpack.c.bf16 %v1352_v51, %v1351_v54 }
 0x25e   : > { %v1338_v0 = vmax.f32 %v1192_v56, 0.0  ;;  %v1354_v1 = vmax.f32 %v2687_v58, 0.0  ;;  %v2696_v2 = vadd.f32 %v2673_v41, %v1266_v59 }
 0x25f   : > { %1817 = vst [vmem:[%s2563_s18] sm:$0xff] %v1816_v60   ;;  %v1337_v3 = vmax.f32 %v1187_v62, 0.0  ;;  %v2108_v4 = vpop.f32.mrb[4].mxu0  ;;  %1900 = vst [vmem:[%s2563_s18 + $0x40] sm:$0xff] %v1856_v63   ;;  %v2132_v5 = vpop.f32.mrb[4].mxu1 }
 0x260   : > { %v1202_v6 = vadd.f32 %v2108_v4, %v2673_v41  ;;  %v1196_v7 = vpop.f32.mrb[5].mxu0  ;;  %v1353_v8 = vmax.f32 %v2696_v2, 0.0  ;;  %v2703_v9 = vadd.f32 %v2132_v5, %v2673_v41  ;;  %v1276_v10 = vpop.f32.mrb[5].mxu1 }
 0x261   : > { %v1821_v11 = vpack.c.bf16 %v1338_v0, %v1337_v3  ;;  %v1528_v12 = vadd.f32 %v1527_v61, %v1337_v3  ;;  %v1197_v13 = vadd.f32 %v2673_v41, %v1196_v7  ;;  %v2707_v14 = vadd.f32 %v2673_v41, %v1276_v10 }
 0x262   : > { %v1340_v15 = vmax.f32 %v1202_v6, 0.0  ;;  %v1861_v16 = vpack.c.bf16 %v1354_v1, %v1353_v8  ;;  %v1356_v17 = vmax.f32 %v2703_v9, 0.0 }
 0x263   : > { %1893 = vst [vmem:[%s2563_s18 + $0x8] sm:$0xff] %v1821_v11   ;;  %v1339_v18 = vmax.f32 %v1197_v13, 0.0  ;;  %v1529_v19 = vadd.f32 %v1528_v12, %v1338_v0  ;;  %v2111_v20 = vpop.f32.mrb[6].mxu0  ;;  %v1355_v21 = vmax.f32 %v2707_v14, 0.0  ;;  %v2135_v22 = vpop.f32.mrb[6].mxu1 }
 0x264   : > { %v1212_v23 = vadd.f32 %v2111_v20, %v2673_v41  ;;  %v1206_v24 = vpop.f32.mrb[7].mxu0  ;;  %1901 = vst [vmem:[%s2563_s18 + $0x48] sm:$0xff] %v1861_v16   ;;  %v2719_v25 = vadd.f32 %v2135_v22, %v2673_v41  ;;  %v1286_v26 = vpop.f32.mrb[7].mxu1 }
 0x265   : > { %v1826_v27 = vpack.c.bf16 %v1340_v15, %v1339_v18  ;;  %v1530_v28 = vadd.f32 %v1529_v19, %v1339_v18  ;;  %v1207_v29 = vadd.f32 %v2673_v41, %v1206_v24  ;;  %v1866_v30 = vpack.c.bf16 %v1356_v17, %v1355_v21 }
 0x266   : > { %v1342_v31 = vmax.f32 %v1212_v23, 0.0  ;;  %v1358_v32 = vmax.f32 %v2719_v25, 0.0  ;;  %v2728_v33 = vadd.f32 %v2673_v41, %v1286_v26 }
 0x267   : > { %1894 = vst [vmem:[%s2563_s18 + $0x10] sm:$0xff] %v1826_v27   ;;  %v1341_v34 = vmax.f32 %v1207_v29, 0.0  ;;  %v1531_v35 = vadd.f32 %v1530_v28, %v1340_v15  ;;  %v2114_v36 = vpop.f32.mrb[8].mxu0  ;;  %1902 = vst [vmem:[%s2563_s18 + $0x50] sm:$0xff] %v1866_v30   ;;  %v2138_v37 = vpop.f32.mrb[8].mxu1 }
 0x268   : > { %v1222_v38 = vadd.f32 %v2114_v36, %v2673_v41  ;;  %v1216_v39 = vpop.f32.mrb[9].mxu0  ;;  %v1357_v40 = vmax.f32 %v2728_v33, 0.0  ;;  %v2735_v42 = vadd.f32 %v2138_v37, %v2673_v41  ;;  %v1296_v43 = vpop.f32.mrb[9].mxu1 }
 0x269   : > { %v1831_v44 = vpack.c.bf16 %v1342_v31, %v1341_v34  ;;  %v1532_v45 = vadd.f32 %v1531_v35, %v1341_v34  ;;  %v1217_v47 = vadd.f32 %v2673_v41, %v1216_v39  ;;  %v2739_v48 = vadd.f32 %v2673_v41, %v1296_v43 }
 0x26a   : > { %v1344_v50 = vmax.f32 %v1222_v38, 0.0  ;;  %v1871_v52 = vpack.c.bf16 %v1358_v32, %v1357_v40  ;;  %v1360_v53 = vmax.f32 %v2735_v42, 0.0 }
 0x26b   : > { %1895 = vst [vmem:[%s2563_s18 + $0x18] sm:$0xff] %v1831_v44   ;;  %v1343_v55 = vmax.f32 %v1217_v47, 0.0  ;;  %v1533_v56 = vadd.f32 %v1532_v45, %v1342_v31  ;;  %v2117_v57 = vpop.f32.mrb[10].mxu0  ;;  %v1359_v59 = vmax.f32 %v2739_v48, 0.0  ;;  %v2141_v60 = vpop.f32.mrb[10].mxu1 }
 0x26c   : > { %v1232_v61 = vadd.f32 %v2117_v57, %v2673_v41  ;;  %v1226_v62 = vpop.f32.mrb[11].mxu0  ;;  %1903 = vst [vmem:[%s2563_s18 + $0x58] sm:$0xff] %v1871_v52   ;;  %v2751_v63 = vadd.f32 %v2141_v60, %v2673_v41  ;;  %v1306_v0 = vpop.f32.mrb[11].mxu1 }
 0x26d   : > { %v1836_v3 = vpack.c.bf16 %v1344_v50, %v1343_v55  ;;  %v1534_v4 = vadd.f32 %v1533_v56, %v1343_v55  ;;  %v1227_v5 = vadd.f32 %v2673_v41, %v1226_v62  ;;  %v1876_v6 = vpack.c.bf16 %v1360_v53, %v1359_v59 }
 0x26e   : > { %v1346_v7 = vmax.f32 %v1232_v61, 0.0  ;;  %v1362_v10 = vmax.f32 %v2751_v63, 0.0  ;;  %v1307_v11 = vadd.f32 %v2673_v41, %v1306_v0 }
 0x26f   : > { %1896 = vst [vmem:[%s2563_s18 + $0x20] sm:$0xff] %v1836_v3   ;;  %v1345_v12 = vmax.f32 %v1227_v5, 0.0  ;;  %v1535_v13 = vadd.f32 %v1534_v4, %v1344_v50  ;;  %v2120_v15 = vpop.f32.mrb[12].mxu0  ;;  %1904 = vst [vmem:[%s2563_s18 + $0x60] sm:$0xff] %v1876_v6   ;;  %v2144_v16 = vpop.f32.mrb[12].mxu1 }
 0x270   : > { %v1242_v18 = vadd.f32 %v2120_v15, %v2673_v41  ;;  %v1236_v19 = vpop.f32.mrb[13].mxu0  ;;  %v1361_v20 = vmax.f32 %v1307_v11, 0.0  ;;  %v1322_v22 = vadd.f32 %v2144_v16, %v2673_v41  ;;  %v1316_v23 = vpop.f32.mrb[13].mxu1 }
 0x271   : > { %v1841_v24 = vpack.c.bf16 %v1346_v7, %v1345_v12  ;;  %v1536_v26 = vadd.f32 %v1535_v13, %v1345_v12  ;;  %v1237_v27 = vadd.f32 %v2673_v41, %v1236_v19  ;;  %v1317_v28 = vadd.f32 %v2673_v41, %v1316_v23 }
 0x272   : > { %v1348_v29 = vmax.f32 %v1242_v18, 0.0  ;;  %v1881_v30 = vpack.c.bf16 %v1362_v10, %v1361_v20  ;;  %v1364_v31 = vmax.f32 %v1322_v22, 0.0 }
 0x273   : > { %1897 = vst [vmem:[%s2563_s18 + $0x28] sm:$0xff] %v1841_v24   ;;  %v1347_v34 = vmax.f32 %v1237_v27, 0.0  ;;  %v1537_v35 = vadd.f32 %v1536_v26, %v1346_v7  ;;  %v2123_v36 = vpop.f32.mrb[14].mxu0  ;;  %v1363_v37 = vmax.f32 %v1317_v28, 0.0  ;;  %v2147_v38 = vpop.f32.mrb[14].mxu1 }
 0x274   : > { %v1252_v39 = vadd.f32 %v2123_v36, %v2673_v41  ;;  %v1246_v43 = vpop.f32.mrb[15].mxu0  ;;  %1905 = vst [vmem:[%s2563_s18 + $0x68] sm:$0xff] %v1881_v30   ;;  %v1332_v44 = vadd.f32 %v2147_v38, %v2673_v41  ;;  %v1326_v45 = vpop.f32.mrb[15].mxu1 }
 0x275   : > { %v1846_v47 = vpack.c.bf16 %v1348_v29, %v1347_v34  ;;  %v1538_v50 = vadd.f32 %v1537_v35, %v1347_v34  ;;  %v1247_v52 = vadd.f32 %v2673_v41, %v1246_v43  ;;  %v1886_v55 = vpack.c.bf16 %v1364_v31, %v1363_v37 }
 0x276   : > { %v1350_v56 = vmax.f32 %v1252_v39, 0.0  ;;  %v1366_v57 = vmax.f32 %v1332_v44, 0.0  ;;  %v1327_v60 = vadd.f32 %v2673_v41, %v1326_v45 }
 0x277   : > { %1898 = vst [vmem:[%s2563_s18 + $0x30] sm:$0xff] %v1846_v47   ;;  %v1349_v61 = vmax.f32 %v1247_v52, 0.0  ;;  %v1539_v62 = vadd.f32 %v1538_v50, %v1348_v29  ;;  %1906 = vst [vmem:[%s2563_s18 + $0x70] sm:$0xff] %v1886_v55  }
 0x278   : > { %v1365_v63 = vmax.f32 %v1327_v60, 0.0 }
 0x279   : > { %v1851_v0 = vpack.c.bf16 %v1350_v56, %v1349_v61  ;;  %v1540_v3 = vadd.f32 %v1539_v62, %v1349_v61 }
 0x27a   : > { %v1891_v4 = vpack.c.bf16 %v1366_v57, %v1365_v63 }
 0x27b   : > { %1899 = vst [vmem:[%s2563_s18 + $0x38] sm:$0xff] %v1851_v0   ;;  %v1541_v5 = vadd.f32 %v1540_v3, %v1350_v56 }
 0x27c   : > { %1907 = vst [vmem:[%s2563_s18 + $0x78] sm:$0xff] %v1891_v4  }
 0x27d   : > { %v1542_v6 = vadd.f32 %v1541_v5, %v1351_v54 }
 0x27f   : > { %v1543_v7 = vadd.f32 %v1542_v6, %v1352_v51 }
 0x281   : > { %v1544_v41 = vadd.f32 %v1543_v7, %v1353_v8 }
 0x283   : > { %v1545_v11 = vadd.f32 %v1544_v41, %v1354_v1 }
 0x285   : > { %v1546_v12 = vadd.f32 %v1545_v11, %v1355_v21 }
 0x287   : > { %v1547_v13 = vadd.f32 %v1546_v12, %v1356_v17 }
 0x289   : > { %v1548_v49 = vadd.f32 %v1547_v13, %v1357_v40 }
 0x28b   : > { %v1549_v46 = vadd.f32 %v1548_v49, %v1358_v32 }
 0x28d   : > { %v1550_v51 = vadd.f32 %v1549_v46, %v1359_v59 }
 0x28f   : > { %v1551_v54 = vadd.f32 %v1550_v51, %v1360_v53 }
 0x291   : > { %v1552_v58 = vadd.f32 %v1551_v54, %v1361_v20 }
 0x293   : > { %v1553_v1 = vadd.f32 %v1552_v58, %v1362_v10 }
 0x295   : > { %v1554_v2 = vadd.f32 %v1553_v1, %v1363_v37 }
 0x297   : > { %v1555_v8 = vadd.f32 %v1554_v2, %v1364_v31 }
 0x299   : > { %v1556_v14 = vadd.f32 %v1555_v8, %v1365_v63 }
 0x29b   : > { %v1557_v21 = vadd.f32 %v1556_v14, %v1366_v57 }
 0x29d   : > { %1558 = vst [vmem:[%s2568_s16] sm:$0xff] %v1557_v21 }
 0x29e PF: > { %s16_s24 = sadd.s32 1, %s2387_s24   ;;  %s2824_s18 = smov %s2367_s19 }
 0x29f   : > { %p13_p1 = scmp.ge.s32.totalorder %s16_s24, 6   ;;  %s2825_s19 = smov %s2471_s6 }
 0x2a0   : > { %s2826_s20 = smov %s2379_s22  ;;  %s2827_s21 = smov %s2383_s23 }
 0x2a1   : > { %s2828_s22 = smov %s2831_s25  ;;  %s2829_s23 = smov %s2835_s26 }
 0x2a2   :  { %15 = sbr.rel (!%p13_p1) target bundleno = 4 (0x4), region = 132 }

// kernel: gcn_forward.3
= control target key start
LH: loop header
LB: loop body
LE: loop exit
PB: predicated region body
PF: predicated region fallthrough
CT: control target
= control target key end

     0   :  { %s3016_s0 = inlined_call_operand.vmem [shape: bf16[512,512], index: 0, kind: input, shape index: {}]   ;;  %s3017_s1 = inlined_call_operand.vmem [shape: bf16[512,128], index: 1, kind: input, shape index: {}]   ;;  %s3018_s2 = inlined_call_operand.vmem [shape: f32[128,128], index: 2, kind: input, shape index: {}]   ;;  %s3019_s3 = inlined_call_operand.vmem [shape: f32[1,128], index: 3, kind: input, shape index: {}]   ;;  %s3020_s4 = inlined_call_operand.hbm [shape: bf16[512,128], index: 4, kind: output, shape index: {0}]   ;;  %s3021_s5 = inlined_call_operand.vmem [shape: f32[16,128], index: 5, kind: output, shape index: {1}]  }
   0x1   :  { %3026 = sst [smem:[#allocation10_spill]] %s3016_s0 }
   0x2   :  { %11 = vsyncpa [#allocation5], 0 }
   0x3   :  { %13 = vsyncpa [#allocation5 + $0x1], 0  ;;  %s2532_s18 = smov 0   ;;  %s2534_s19 = smov 0  }
   0x4   :  { %s2536_s20 = smov 0   ;;  %s2538_s21 = smov 0  }
   0x5   :  { %s2540_s22 = smov 0   ;;  %s2542_s23 = smov 0  }
   0x6   :  { %s2544_s24 = smov 0   ;;  %s2546_s25 = smov 0  }
   0x7   :  { %s2548_s26 = smov 0   ;;  %s2550_s27 = smov 0  }
   0x8 LB: > { %3027 = sst [smem:[#allocation7_spill]] %s2492_s26  ;;  %s1696_s28 = sadd.s32 4294967295, %s2496_s27   ;;  %s2496_s27 = sphi %s2550_s27, %s19_s27   ;;  %s2492_s26 = sphi %s2548_s26, %s3037_s26   ;;  %s2488_s25 = sphi %s2546_s25, %s3044_s25   ;;  %s2484_s24 = sphi %s2544_s24, %s3035_s24   ;;  %s2480_s23 = sphi %s2542_s23, %s3043_s23   ;;  %s2476_s22 = sphi %s2540_s22, %s3042_s22   ;;  %s2472_s21 = sphi %s2538_s21, %s3041_s21   ;;  %s2468_s20 = sphi %s2536_s20, %s3040_s20   ;;  %s2464_s19 = sphi %s2534_s19, %s3039_s19   ;;  %s2460_s18 = sphi %s2532_s18, %s3038_s18  }
   0x9   : > { %s1697_s29 = sadd.s32 4294967294, %s2496_s27   ;;  %s28_s30 = sadd.s32 1, %s2488_s25 }
   0xa   : > { %s31_s6 = sadd.s32 1, %s2492_s26  ;;  %p29_p0 = scmp.ge.s32.totalorder %s28_s30, 2 }
   0xb   : > { %s40_s7 = sadd.s32 1, %s2476_s22  ;;  %p47_p1 = scmp.ne.s32.totalorder %s2476_s22, %s2472_s21 }
   0xc   : > { %p48_p2 = scmp.eq.s32.totalorder %s2496_s27, 0  ;;  %s3046_s30 = smov (%p29_p0, %s28_s30), 0 }
   0xd   : > { %3028 = sst [smem:[#allocation8_spill]] %s3046_s30  ;;  %s3048_s6 = smov (!%p29_p0, %s31_s6), %s2492_s26 }
   0xe   : > { %s36_s8 = ssub.s32 %s2488_s25, %s3046_s30  ;;  %p2595_p3 = por %p48_p2, %p47_p1 }
   0xf   : > { %p33_p4 = scmp.ge.s32.totalorder %s3048_s6, 2  ;;  %s134_s10 = sadd.s32 1, %s2468_s20 }
  0x10   : > { %p144_p5 = scmp.ne.s32.totalorder %s2468_s20, %s2464_s19  ;;  %p145_p6 = scmp.eq.s32.totalorder %s1696_s28, 3 }
  0x11   : > { %s3050_s6 = smov (%p33_p4, %s3048_s6), 0  ;;  %p150_p8 = scmp.ne.s32.totalorder %s2464_s19, %s2460_s18 }
  0x12   : > { %3030 = sst [smem:[#allocation9_spill]] %s3050_s6  ;;  %p2604_p7 = por %p145_p6, %p144_p5 }
  0x13   : > { %s35_s12 = ssub.s32 %s2492_s26, %s3050_s6  ;;  %p151_p9 = scmp.eq.s32.totalorder %s1697_s29, 3 }
  0x14   : > { %s37_s13 = sor.u32 %s36_s8, %s35_s12  ;;  %p132_p10 = scmp.eq.s32.totalorder %s35_s12, 0 }
  0x15   : > { %p38_p11 = scmp.eq.s32.totalorder %s37_s13, 0  ;;  %p2612_p12 = por %p151_p9, %p150_p8 }
  0x16   : > { %s2617_s15 = scalar_select %p132_p10, %s2468_s20, %s134_s10  }
  0x17   : > { %s2620_s16 = scalar_select %p38_p11, %s2476_s22, %s40_s7  }
  0x18   : > { %p1699_p13 = scmp.ge.s32.totalorder %s2496_s27, 4 }
  0x1a   : > { %199 = sbr.rel (%p1699_p13) target bundleno = 59 (0x3b), region = 24 }
  0x21   : > { %202 = sbr.rel (!%p2595_p3) target bundleno = 59 (0x3b), region = 28  ;;  %s204_s17 = sand.u32 (%p2595_p3), 1, %s2476_s22  }
  0x22   : > { %s1702_s28 = sshll.u32 (%p2595_p3), %s2488_s25, 1  ;;  %s1700_s29 = sshll.u32 (%p2595_p3), %s204_s17, 8 }
  0x23   : > { %s1799_s8 = sshll.u32 (%p2595_p3), %s2492_s26, 7  ;;  %s3033_s0 = sld [smem:[#allocation10_spill]] (%p2595_p3) }
  0x24   : > { %s210_s12 = sadd.s32 (%p2595_p3), %s1799_s8, %s1702_s28  ;;  %s2636_s9 = scalar_lea.vmem (%p2595_p3), [#allocation3], %s1700_s29 }
  0x25   : > { %s1704_s13 = sshll.u32 (%p2595_p3), %s210_s12, 2 }
  0x29   : > { %s2631_s7 = scalar_lea.vmem %s3033_s0, %s1704_s13 }
  0x2a   : > { %v302_v0 = vld [vmem:[%s2631_s7] sm:$0xff]  ;;  %v304_v1 = vld [vmem:[%s2631_s7 + $0x10] sm:$0xff] }
  0x2b   : > { %v306_v2 = vld [vmem:[%s2631_s7 + $0x20] sm:$0xff]  ;;  %303 = vst [vmem:[%s2636_s9] sm:$0xff] %v302_v0  ;;  %305 = vst [vmem:[%s2636_s9 + $0x8] sm:$0xff] %v304_v1  ;;  %v308_v3 = vld [vmem:[%s2631_s7 + $0x30] sm:$0xff] }
  0x2c   : > { %307 = vst [vmem:[%s2636_s9 + $0x10] sm:$0xff] %v306_v2  ;;  %v310_v4 = vld [vmem:[%s2631_s7 + $0x40] sm:$0xff]  ;;  %v312_v5 = vld [vmem:[%s2631_s7 + $0x50] sm:$0xff]  ;;  %309 = vst [vmem:[%s2636_s9 + $0x18] sm:$0xff] %v308_v3 }
  0x2d   : > { %311 = vst [vmem:[%s2636_s9 + $0x20] sm:$0xff] %v310_v4  ;;  %313 = vst [vmem:[%s2636_s9 + $0x28] sm:$0xff] %v312_v5  ;;  %v314_v6 = vld [vmem:[%s2631_s7 + $0x60] sm:$0xff]  ;;  %v316_v7 = vld [vmem:[%s2631_s7 + $0x70] sm:$0xff] }
  0x2e   : > { %v318_v8 = vld [vmem:[%s2631_s7 + $0x80] sm:$0xff]  ;;  %315 = vst [vmem:[%s2636_s9 + $0x30] sm:$0xff] %v314_v6  ;;  %317 = vst [vmem:[%s2636_s9 + $0x38] sm:$0xff] %v316_v7  ;;  %v320_v9 = vld [vmem:[%s2631_s7 + $0x90] sm:$0xff] }
  0x2f   : > { %319 = vst [vmem:[%s2636_s9 + $0x40] sm:$0xff] %v318_v8  ;;  %v322_v10 = vld [vmem:[%s2631_s7 + $0xa0] sm:$0xff]  ;;  %v324_v11 = vld [vmem:[%s2631_s7 + $0xb0] sm:$0xff]  ;;  %321 = vst [vmem:[%s2636_s9 + $0x48] sm:$0xff] %v320_v9 }
  0x30   : > { %323 = vst [vmem:[%s2636_s9 + $0x50] sm:$0xff] %v322_v10  ;;  %325 = vst [vmem:[%s2636_s9 + $0x58] sm:$0xff] %v324_v11  ;;  %v326_v12 = vld [vmem:[%s2631_s7 + $0xc0] sm:$0xff]  ;;  %v328_v13 = vld [vmem:[%s2631_s7 + $0xd0] sm:$0xff] }
  0x31   : > { %v330_v14 = vld [vmem:[%s2631_s7 + $0xe0] sm:$0xff]  ;;  %327 = vst [vmem:[%s2636_s9 + $0x60] sm:$0xff] %v326_v12  ;;  %329 = vst [vmem:[%s2636_s9 + $0x68] sm:$0xff] %v328_v13  ;;  %v332_v15 = vld [vmem:[%s2631_s7 + $0xf0] sm:$0xff] }
  0x32   : > { %331 = vst [vmem:[%s2636_s9 + $0x70] sm:$0xff] %v330_v14  ;;  %v334_v16 = vld [vmem:[%s2631_s7 + $0x100] sm:$0xff]  ;;  %v336_v17 = vld [vmem:[%s2631_s7 + $0x110] sm:$0xff]  ;;  %333 = vst [vmem:[%s2636_s9 + $0x78] sm:$0xff] %v332_v15 }
  0x33   : > { %335 = vst [vmem:[%s2636_s9 + $0x80] sm:$0xff] %v334_v16  ;;  %337 = vst [vmem:[%s2636_s9 + $0x88] sm:$0xff] %v336_v17  ;;  %v338_v18 = vld [vmem:[%s2631_s7 + $0x120] sm:$0xff]  ;;  %v340_v19 = vld [vmem:[%s2631_s7 + $0x130] sm:$0xff] }
  0x34   : > { %v342_v20 = vld [vmem:[%s2631_s7 + $0x140] sm:$0xff]  ;;  %339 = vst [vmem:[%s2636_s9 + $0x90] sm:$0xff] %v338_v18  ;;  %341 = vst [vmem:[%s2636_s9 + $0x98] sm:$0xff] %v340_v19  ;;  %v344_v21 = vld [vmem:[%s2631_s7 + $0x150] sm:$0xff] }
  0x35   : > { %343 = vst [vmem:[%s2636_s9 + $0xa0] sm:$0xff] %v342_v20  ;;  %v346_v22 = vld [vmem:[%s2631_s7 + $0x160] sm:$0xff]  ;;  %v348_v23 = vld [vmem:[%s2631_s7 + $0x170] sm:$0xff]  ;;  %345 = vst [vmem:[%s2636_s9 + $0xa8] sm:$0xff] %v344_v21 }
  0x36   : > { %347 = vst [vmem:[%s2636_s9 + $0xb0] sm:$0xff] %v346_v22  ;;  %349 = vst [vmem:[%s2636_s9 + $0xb8] sm:$0xff] %v348_v23  ;;  %v350_v24 = vld [vmem:[%s2631_s7 + $0x180] sm:$0xff]  ;;  %v352_v25 = vld [vmem:[%s2631_s7 + $0x190] sm:$0xff] }
  0x37   : > { %v354_v26 = vld [vmem:[%s2631_s7 + $0x1a0] sm:$0xff]  ;;  %351 = vst [vmem:[%s2636_s9 + $0xc0] sm:$0xff] %v350_v24  ;;  %353 = vst [vmem:[%s2636_s9 + $0xc8] sm:$0xff] %v352_v25  ;;  %v356_v27 = vld [vmem:[%s2631_s7 + $0x1b0] sm:$0xff] }
  0x38   : > { %355 = vst [vmem:[%s2636_s9 + $0xd0] sm:$0xff] %v354_v26  ;;  %v358_v28 = vld [vmem:[%s2631_s7 + $0x1c0] sm:$0xff]  ;;  %v360_v29 = vld [vmem:[%s2631_s7 + $0x1d0] sm:$0xff]  ;;  %357 = vst [vmem:[%s2636_s9 + $0xd8] sm:$0xff] %v356_v27 }
  0x39   : > { %359 = vst [vmem:[%s2636_s9 + $0xe0] sm:$0xff] %v358_v28  ;;  %361 = vst [vmem:[%s2636_s9 + $0xe8] sm:$0xff] %v360_v29  ;;  %v362_v30 = vld [vmem:[%s2631_s7 + $0x1e0] sm:$0xff]  ;;  %v364_v31 = vld [vmem:[%s2631_s7 + $0x1f0] sm:$0xff] }
  0x3a   : > { %363 = vst [vmem:[%s2636_s9 + $0xf0] sm:$0xff] %v362_v30  ;;  %365 = vst [vmem:[%s2636_s9 + $0xf8] sm:$0xff] %v364_v31 }
  0x3b PF: > { %p1705_p0 = scmp.ge.s32.totalorder %s2496_s27, 1  ;;  %p379_p1 = scmp.lt.s32.totalorder %s2496_s27, 5 }
  0x3d   : > { %p380_p2 = pnand %p1705_p0, %p379_p1 }
  0x3e   : > { %s386_s6 = sand.u32 (!%p380_p2), 1, %s2472_s21   ;;  %s3025_s17 = sand.u32 (!%p380_p2), 1, %s2464_s19  }
  0x3f   : > { %383 = sbr.rel (%p380_p2) target bundleno = 715 (0x2cb), region = 70  ;;  %s1706_s28 = sshll.u32 (!%p380_p2), %s386_s6, 8 }
  0x40   : > { %s1707_s29 = sshll.u32 (!%p380_p2), %s3025_s17, 7  ;;  %s1708_s8 = sshll.u32 (!%p380_p2), %s2480_s23, 5 }
  0x41   : > { %p431_p3 = scmp.lt.s32.totalorder (!%p380_p2), %s2484_s24, 1  ;;  %p425_p4 = scmp.lt.s32.totalorder (!%p380_p2), %s1708_s8, 63 }
  0x42   : > { %s2718_s6 = scalar_lea.vmem (!%p380_p2), [#allocation3], %s1706_s28  ;;  %s2720_s17 = scalar_lea.vmem (!%p380_p2), [#allocation4], %s1707_s29 }
  0x43   : > { %p1711_p5 = scmp.ne.s32.totalorder (!%p380_p2), %s2480_s23, 0 }
  0x46   : > { %s432_s12 = scalar_select %p431_p3, %s2484_s24, 1 }
  0x47   : > { %s3052_s8 = smov (!%p425_p4, %s1708_s8), 63  ;;  %439 = sbr.rel (%p1711_p5) target bundleno = 89 (0x59), region = 78 }
  0x48   : > { %s1710_s13 = sshll.u32 %s432_s12, 3  ;;  %s1709_s10 = sshll.u32 %s3052_s8, 2  ;;  %v2498_v32 = vmov (!%p1711_p5), 0.0  }
  0x49   : > { %s2711_s0 = scalar_lea.vmem %s3021_s5, %s1710_s13  ;;  %s2716_s21 = scalar_lea.vmem %s3017_s1, %s1709_s10  ;;  %440 = vst [vmem:[#allocation2] sm:$0xff] (!%p1711_p5), %v2498_v32  ;;  %441 = vst [vmem:[#allocation2 + $0x8] sm:$0xff] (!%p1711_p5), %v2498_v32 }
  0x4a   : > { %442 = vst [vmem:[#allocation2 + $0x10] sm:$0xff] (!%p1711_p5), %v2498_v32  ;;  %443 = vst [vmem:[#allocation2 + $0x18] sm:$0xff] (!%p1711_p5), %v2498_v32 }
  0x4b   : > { %444 = vst [vmem:[#allocation2 + $0x20] sm:$0xff] (!%p1711_p5), %v2498_v32  ;;  %445 = vst [vmem:[#allocation2 + $0x28] sm:$0xff] (!%p1711_p5), %v2498_v32 }
  0x4c   : > { %446 = vst [vmem:[#allocation2 + $0x30] sm:$0xff] (!%p1711_p5), %v2498_v32  ;;  %447 = vst [vmem:[#allocation2 + $0x38] sm:$0xff] (!%p1711_p5), %v2498_v32 }
  0x4d   : > { %448 = vst [vmem:[#allocation2 + $0x40] sm:$0xff] (!%p1711_p5), %v2498_v32  ;;  %449 = vst [vmem:[#allocation2 + $0x48] sm:$0xff] (!%p1711_p5), %v2498_v32 }
  0x4e   : > { %450 = vst [vmem:[#allocation2 + $0x50] sm:$0xff] %v2498_v32  ;;  %451 = vst [vmem:[#allocation2 + $0x58] sm:$0xff] %v2498_v32 }
  0x4f   : > { %452 = vst [vmem:[#allocation2 + $0x60] sm:$0xff] %v2498_v32  ;;  %453 = vst [vmem:[#allocation2 + $0x68] sm:$0xff] %v2498_v32 }
  0x50   : > { %454 = vst [vmem:[#allocation2 + $0x70] sm:$0xff] %v2498_v32  ;;  %455 = vst [vmem:[#allocation2 + $0x78] sm:$0xff] %v2498_v32 }
  0x51   : > { %456 = vst [vmem:[#allocation2 + $0x80] sm:$0xff] %v2498_v32  ;;  %457 = vst [vmem:[#allocation2 + $0x88] sm:$0xff] %v2498_v32 }
  0x52   : > { %458 = vst [vmem:[#allocation2 + $0x90] sm:$0xff] %v2498_v32  ;;  %459 = vst [vmem:[#allocation2 + $0x98] sm:$0xff] %v2498_v32 }
  0x53   : > { %460 = vst [vmem:[#allocation2 + $0xa0] sm:$0xff] %v2498_v32  ;;  %461 = vst [vmem:[#allocation2 + $0xa8] sm:$0xff] %v2498_v32 }
  0x54   : > { %462 = vst [vmem:[#allocation2 + $0xb0] sm:$0xff] %v2498_v32  ;;  %463 = vst [vmem:[#allocation2 + $0xb8] sm:$0xff] %v2498_v32 }
  0x55   : > { %464 = vst [vmem:[#allocation2 + $0xc0] sm:$0xff] %v2498_v32  ;;  %465 = vst [vmem:[#allocation2 + $0xc8] sm:$0xff] %v2498_v32 }
  0x56   : > { %466 = vst [vmem:[#allocation2 + $0xd0] sm:$0xff] %v2498_v32  ;;  %467 = vst [vmem:[#allocation2 + $0xd8] sm:$0xff] %v2498_v32 }
  0x57   : > { %468 = vst [vmem:[#allocation2 + $0xe0] sm:$0xff] %v2498_v32  ;;  %469 = vst [vmem:[#allocation2 + $0xe8] sm:$0xff] %v2498_v32 }
  0x58   : > { %470 = vst [vmem:[#allocation2 + $0xf0] sm:$0xff] %v2498_v32  ;;  %471 = vst [vmem:[#allocation2 + $0xf8] sm:$0xff] %v2498_v32 }
  0x59 PF: > { %v2322_v33 = vld [vmem:[%s2716_s21 + $0x40] sm:$0xff]   ;;  %v2324_v35 = vld [vmem:[%s2716_s21 + $0x48] sm:$0xff]   ;;  %v2326_v37 = vld [vmem:[%s2716_s21 + $0x50] sm:$0xff]   ;;  %p1760_p6 = scmp.ne.s32.totalorder %s2480_s23, 1 }
  0x5a   : > { %v2323_v34 = vld [vmem:[%s2716_s21] sm:$0xff]   ;;  %1928 = vmatprep.subr.bf16.mxu0 %v2322_v33  ;;  %2200 = vmatprep.subr.bf16.mxu1 %v2322_v33  ;;  %v2325_v36 = vld [vmem:[%s2716_s21 + $0x8] sm:$0xff]   ;;  %v2327_v38 = vld [vmem:[%s2716_s21 + $0x10] sm:$0xff]  }
  0x5b   : > { %1929 = vmatpush3.bf16.msra.mxu0 %v2323_v34  ;;  %2208 = vmatpush3.bf16.msra.mxu1 %v2323_v34  ;;  %v2328_v39 = vld [vmem:[%s2716_s21 + $0x58] sm:$0xff]   ;;  %v2330_v41 = vld [vmem:[%s2716_s21 + $0x60] sm:$0xff]   ;;  %v2332_v43 = vld [vmem:[%s2716_s21 + $0x68] sm:$0xff]  }
  0x5c   : > { %1930 = vmatprep.subr.bf16.mxu0 %v2324_v35  ;;  %2201 = vmatprep.subr.bf16.mxu1 %v2324_v35  ;;  %v2329_v40 = vld [vmem:[%s2716_s21 + $0x18] sm:$0xff]   ;;  %v2331_v42 = vld [vmem:[%s2716_s21 + $0x20] sm:$0xff]   ;;  %v2333_v46 = vld [vmem:[%s2716_s21 + $0x28] sm:$0xff]  }
  0x5d   : > { %v2340_v44 = vld [vmem:[%s2718_s6 + $0x4] ss:$8 sps:$4 sm:$0xff]   ;;  %v2334_v47 = vld [vmem:[%s2716_s21 + $0x70] sm:$0xff]   ;;  %v2336_v49 = vld [vmem:[%s2716_s21 + $0x78] sm:$0xff]  }
  0x5e   : > { %v2343_v45 = vld [vmem:[%s2718_s6 + $0x84] ss:$8 sps:$4 sm:$0xff]   ;;  %856 = vmatprep.mubr.bf16.mxu0 %v2340_v44  ;;  %v2335_v48 = vld [vmem:[%s2716_s21 + $0x30] sm:$0xff]   ;;  %v2337_v50 = vld [vmem:[%s2716_s21 + $0x38] sm:$0xff]  }
  0x5f   : > { %1931 = vmatpush3.bf16.msra.mxu0 %v2325_v36  ;;  %2209 = vmatpush3.bf16.msra.mxu1 %v2325_v36  ;;  %v2338_v51 = vld [vmem:[%s2718_s6] ss:$8 sps:$4 sm:$0xff]   ;;  %v2344_v53 = vld [vmem:[%s2718_s6 + $0x14] ss:$8 sps:$4 sm:$0xff]   ;;  %v2348_v55 = vld [vmem:[%s2718_s6 + $0x10] ss:$8 sps:$4 sm:$0xff]  }
  0x60   : > { %1932 = vmatprep.subr.bf16.mxu0 %v2326_v37  ;;  %2202 = vmatprep.subr.bf16.mxu1 %v2326_v37  ;;  %v2341_v52 = vld [vmem:[%s2718_s6 + $0x80] ss:$8 sps:$4 sm:$0xff]   ;;  %v2346_v54 = vld [vmem:[%s2718_s6 + $0x94] ss:$8 sps:$4 sm:$0xff]   ;;  %v2349_v56 = vld [vmem:[%s2718_s6 + $0x90] ss:$8 sps:$4 sm:$0xff]  }
  0x61   : > { %920 = vmatprep.mubr.bf16.mxu1 %v2343_v45  ;;  %v2350_v57 = vld [vmem:[%s2718_s6 + $0x24] ss:$8 sps:$4 sm:$0xff]   ;;  %v2354_v59 = vld [vmem:[%s2718_s6 + $0x20] ss:$8 sps:$4 sm:$0xff]   ;;  %v2356_v61 = vld [vmem:[%s2718_s6 + $0x34] ss:$8 sps:$4 sm:$0xff]  }
  0x62   : > { %v2352_v58 = vld [vmem:[%s2718_s6 + $0xa4] ss:$8 sps:$4 sm:$0xff]   ;;  %v2355_v60 = vld [vmem:[%s2718_s6 + $0xa0] ss:$8 sps:$4 sm:$0xff]   ;;  %v2358_v62 = vld [vmem:[%s2718_s6 + $0xb4] ss:$8 sps:$4 sm:$0xff]  }
  0x63   : > { %1933 = vmatpush3.bf16.msra.mxu0 %v2327_v38  ;;  %2210 = vmatpush3.bf16.msra.mxu1 %v2327_v38  ;;  %v2360_v63 = vld [vmem:[%s2718_s6 + $0x30] ss:$8 sps:$4 sm:$0xff]   ;;  %v2362_v1 = vld [vmem:[%s2718_s6 + $0x44] ss:$8 sps:$4 sm:$0xff]   ;;  %v2366_v3 = vld [vmem:[%s2718_s6 + $0x40] ss:$8 sps:$4 sm:$0xff]  }
  0x64   : > { %1934 = vmatprep.subr.bf16.mxu0 %v2328_v39  ;;  %2203 = vmatprep.subr.bf16.mxu1 %v2328_v39  ;;  %v2361_v0 = vld [vmem:[%s2718_s6 + $0xb0] ss:$8 sps:$4 sm:$0xff]   ;;  %v2364_v2 = vld [vmem:[%s2718_s6 + $0xc4] ss:$8 sps:$4 sm:$0xff]   ;;  %v2367_v4 = vld [vmem:[%s2718_s6 + $0xc0] ss:$8 sps:$4 sm:$0xff]  }
  0x65   : > { %v2368_v5 = vld [vmem:[%s2718_s6 + $0x54] ss:$8 sps:$4 sm:$0xff]   ;;  %v2372_v7 = vld [vmem:[%s2718_s6 + $0x50] ss:$8 sps:$4 sm:$0xff]   ;;  %v2374_v9 = vld [vmem:[%s2718_s6 + $0x64] ss:$8 sps:$4 sm:$0xff]  }
  0x66   : > { %v2370_v6 = vld [vmem:[%s2718_s6 + $0xd4] ss:$8 sps:$4 sm:$0xff]   ;;  %v2373_v8 = vld [vmem:[%s2718_s6 + $0xd0] ss:$8 sps:$4 sm:$0xff]   ;;  %v2376_v10 = vld [vmem:[%s2718_s6 + $0xe4] ss:$8 sps:$4 sm:$0xff]  }
  0x67   : > { %1935 = vmatpush3.bf16.msra.mxu0 %v2329_v40  ;;  %2211 = vmatpush3.bf16.msra.mxu1 %v2329_v40  ;;  %v2378_v11 = vld [vmem:[%s2718_s6 + $0x60] ss:$8 sps:$4 sm:$0xff]   ;;  %v2380_v13 = vld [vmem:[%s2718_s6 + $0x74] ss:$8 sps:$4 sm:$0xff]   ;;  %v2384_v15 = vld [vmem:[%s2718_s6 + $0x70] ss:$8 sps:$4 sm:$0xff]  }
  0x68   : > { %1936 = vmatprep.subr.bf16.mxu0 %v2330_v41  ;;  %2204 = vmatprep.subr.bf16.mxu1 %v2330_v41  ;;  %v2379_v12 = vld [vmem:[%s2718_s6 + $0xe0] ss:$8 sps:$4 sm:$0xff]   ;;  %v2382_v14 = vld [vmem:[%s2718_s6 + $0xf4] ss:$8 sps:$4 sm:$0xff]   ;;  %v2385_v16 = vld [vmem:[%s2718_s6 + $0xf0] ss:$8 sps:$4 sm:$0xff]  }
  0x69   : > { %v472_v19 = vld [vmem:[#allocation2] sm:$0xff]  ;;  %v473_v27 = vld [vmem:[#allocation2 + $0x8] sm:$0xff]  ;;  %v474_v39 = vld [vmem:[#allocation2 + $0x10] sm:$0xff] }
  0x6a   : > { %v488_v21 = vld [vmem:[#allocation2 + $0x80] sm:$0xff]  ;;  %v489_v29 = vld [vmem:[#allocation2 + $0x88] sm:$0xff]  ;;  %v490_v41 = vld [vmem:[#allocation2 + $0x90] sm:$0xff] }
  0x6b   : > { %1937 = vmatpush3.bf16.msra.mxu0 %v2331_v42  ;;  %2212 = vmatpush3.bf16.msra.mxu1 %v2331_v42 }
  0x6c   : > { %1938 = vmatprep.subr.bf16.mxu0 %v2332_v43  ;;  %2205 = vmatprep.subr.bf16.mxu1 %v2332_v43 }
  0x6f   : > { %1939 = vmatpush3.bf16.msra.mxu0 %v2333_v46  ;;  %2213 = vmatpush3.bf16.msra.mxu1 %v2333_v46 }
  0x70   : > { %1940 = vmatprep.subr.bf16.mxu0 %v2334_v47  ;;  %2206 = vmatprep.subr.bf16.mxu1 %v2334_v47  ;;  %v475_v47 = vld [vmem:[#allocation2 + $0x18] sm:$0xff] }
  0x73   : > { %1941 = vmatpush3.bf16.msra.mxu0 %v2335_v48  ;;  %2214 = vmatpush3.bf16.msra.mxu1 %v2335_v48 }
  0x74   : > { %1942 = vmatprep.subr.bf16.mxu0 %v2336_v49  ;;  %2207 = vmatprep.subr.bf16.mxu1 %v2336_v49  ;;  %v491_v49 = vld [vmem:[#allocation2 + $0x98] sm:$0xff] }
  0x77   : > { %1943 = vmatpush3.bf16.msra.mxu0 %v2337_v50  ;;  %2215 = vmatpush3.bf16.msra.mxu1 %v2337_v50 }
  0x7a   : > { %857 = vmatmul.mubr.bf16.vlgmr.msra.gmra.mrb[0].mxu0 %v2338_v51  ;;  %921 = vmatmul.mubr.bf16.vlgmr.msra.gmra.mrb[0].mxu1 %v2341_v52 }
  0x7b   : > { %864 = vmatprep.mubr.bf16.mxu0 %v2344_v53  ;;  %928 = vmatprep.mubr.bf16.mxu1 %v2346_v54 }
  0x82   : > { %865 = vmatmul.mubr.bf16.gmra.mrb[4].mxu0 %v2348_v55  ;;  %929 = vmatmul.mubr.bf16.gmra.mrb[4].mxu1 %v2349_v56 }
  0x83   : > { %872 = vmatprep.mubr.bf16.mxu0 %v2350_v57  ;;  %936 = vmatprep.mubr.bf16.mxu1 %v2352_v58 }
  0x8a   : > { %873 = vmatmul.mubr.bf16.gmra.mrb[8].mxu0 %v2354_v59  ;;  %937 = vmatmul.mubr.bf16.gmra.mrb[8].mxu1 %v2355_v60  ;;  %v476_v59 = vld [vmem:[#allocation2 + $0x20] sm:$0xff] }
  0x8b   : > { %880 = vmatprep.mubr.bf16.mxu0 %v2356_v61  ;;  %944 = vmatprep.mubr.bf16.mxu1 %v2358_v62  ;;  %v492_v61 = vld [vmem:[#allocation2 + $0xa0] sm:$0xff] }
  0x92   : > { %881 = vmatmul.mubr.bf16.gmra.mrb[12].mxu0 %v2360_v63  ;;  %945 = vmatmul.mubr.bf16.gmra.mrb[12].mxu1 %v2361_v0 }
  0x93   : > { %888 = vmatprep.mubr.bf16.mxu0 %v2362_v1  ;;  %952 = vmatprep.mubr.bf16.mxu1 %v2364_v2 }
  0x9a   : > { %889 = vmatmul.mubr.bf16.gmra.mrb[16].mxu0 %v2366_v3  ;;  %953 = vmatmul.mubr.bf16.gmra.mrb[16].mxu1 %v2367_v4  ;;  %v477_v3 = vld [vmem:[#allocation2 + $0x28] sm:$0xff] }
  0x9b   : > { %896 = vmatprep.mubr.bf16.mxu0 %v2368_v5  ;;  %960 = vmatprep.mubr.bf16.mxu1 %v2370_v6  ;;  %v493_v5 = vld [vmem:[#allocation2 + $0xa8] sm:$0xff] }
  0xa2   : > { %897 = vmatmul.mubr.bf16.gmra.mrb[20].mxu0 %v2372_v7  ;;  %961 = vmatmul.mubr.bf16.gmra.mrb[20].mxu1 %v2373_v8 }
  0xa3   : > { %904 = vmatprep.mubr.bf16.mxu0 %v2374_v9  ;;  %968 = vmatprep.mubr.bf16.mxu1 %v2376_v10 }
  0xaa   : > { %905 = vmatmul.mubr.bf16.gmra.mrb[24].mxu0 %v2378_v11  ;;  %969 = vmatmul.mubr.bf16.gmra.mrb[24].mxu1 %v2379_v12 }
  0xab   : > { %912 = vmatprep.mubr.bf16.mxu0 %v2380_v13  ;;  %976 = vmatprep.mubr.bf16.mxu1 %v2382_v14 }
  0xb2   : > { %913 = vmatmul.mubr.bf16.gmra.mrb[28].mxu0 %v2384_v15  ;;  %977 = vmatmul.mubr.bf16.gmra.mrb[28].mxu1 %v2385_v16  ;;  %v478_v15 = vld [vmem:[#allocation2 + $0x30] sm:$0xff] }
 0x14d   : > { %v1944_v17 = vpop.f32.mrb[0].mxu0  ;;  %v1992_v18 = vpop.f32.mrb[0].mxu1 }
 0x14e   : > { %v1945_v20 = vpop.f32.mrb[1].mxu0  ;;  %v1993_v22 = vpop.f32.mrb[1].mxu1 }
 0x14f   : > { %v1946_v23 = vadd.f32 %v1945_v20, %v1944_v17  ;;  %v1994_v24 = vadd.f32 %v1993_v22, %v1992_v18  ;;  %v1947_v25 = vpop.f32.mrb[2].mxu0  ;;  %v1995_v26 = vpop.f32.mrb[2].mxu1  ;;  %v494_v17 = vld [vmem:[#allocation2 + $0xb0] sm:$0xff] }
 0x150   : > { %v1948_v28 = vpop.f32.mrb[3].mxu0  ;;  %v1996_v30 = vpop.f32.mrb[3].mxu1 }
 0x151   : > { %v985_v31 = vadd.f32 %v1946_v23, %v472_v19  ;;  %v1001_v32 = vadd.f32 %v1994_v24, %v488_v21  ;;  %v1949_v33 = vadd.f32 %v1948_v28, %v1947_v25  ;;  %v1997_v34 = vadd.f32 %v1996_v30, %v1995_v26  ;;  %v479_v23 = vld [vmem:[#allocation2 + $0x38] sm:$0xff] }
 0x152   : > { %v495_v25 = vld [vmem:[#allocation2 + $0xb8] sm:$0xff] }
 0x153   : > { %1017 = vst [vmem:[#allocation2] sm:$0xff] %v985_v31  ;;  %1033 = vst [vmem:[#allocation2 + $0x80] sm:$0xff] %v1001_v32  ;;  %v986_v35 = vadd.f32 %v1949_v33, %v473_v27  ;;  %v1002_v36 = vadd.f32 %v1997_v34, %v489_v29 }
 0x155   : > { %1018 = vst [vmem:[#allocation2 + $0x8] sm:$0xff] %v986_v35  ;;  %1034 = vst [vmem:[#allocation2 + $0x88] sm:$0xff] %v1002_v36  ;;  %v1950_v37 = vpop.f32.mrb[4].mxu0  ;;  %v1998_v38 = vpop.f32.mrb[4].mxu1  ;;  %v480_v35 = vld [vmem:[#allocation2 + $0x40] sm:$0xff] }
 0x156   : > { %v1951_v40 = vpop.f32.mrb[5].mxu0  ;;  %v1999_v42 = vpop.f32.mrb[5].mxu1 }
 0x157   : > { %v1952_v43 = vadd.f32 %v1951_v40, %v1950_v37  ;;  %v2000_v44 = vadd.f32 %v1999_v42, %v1998_v38  ;;  %v1953_v45 = vpop.f32.mrb[6].mxu0  ;;  %v2001_v46 = vpop.f32.mrb[6].mxu1  ;;  %v496_v37 = vld [vmem:[#allocation2 + $0xc0] sm:$0xff] }
 0x158   : > { %v1954_v48 = vpop.f32.mrb[7].mxu0  ;;  %v2002_v50 = vpop.f32.mrb[7].mxu1 }
 0x159   : > { %v987_v51 = vadd.f32 %v1952_v43, %v474_v39  ;;  %v1003_v52 = vadd.f32 %v2000_v44, %v490_v41  ;;  %v1955_v53 = vadd.f32 %v1954_v48, %v1953_v45  ;;  %v2003_v54 = vadd.f32 %v2002_v50, %v2001_v46  ;;  %v481_v43 = vld [vmem:[#allocation2 + $0x48] sm:$0xff] }
 0x15a   : > { %v497_v45 = vld [vmem:[#allocation2 + $0xc8] sm:$0xff] }
 0x15b   : > { %1019 = vst [vmem:[#allocation2 + $0x10] sm:$0xff] %v987_v51  ;;  %1035 = vst [vmem:[#allocation2 + $0x90] sm:$0xff] %v1003_v52  ;;  %v988_v55 = vadd.f32 %v1955_v53, %v475_v47  ;;  %v1004_v56 = vadd.f32 %v2003_v54, %v491_v49 }
 0x15d   : > { %1020 = vst [vmem:[#allocation2 + $0x18] sm:$0xff] %v988_v55  ;;  %1036 = vst [vmem:[#allocation2 + $0x98] sm:$0xff] %v1004_v56  ;;  %v1956_v57 = vpop.f32.mrb[8].mxu0  ;;  %v2004_v58 = vpop.f32.mrb[8].mxu1  ;;  %v482_v55 = vld [vmem:[#allocation2 + $0x50] sm:$0xff] }
 0x15e   : > { %v1957_v60 = vpop.f32.mrb[9].mxu0  ;;  %v2005_v62 = vpop.f32.mrb[9].mxu1 }
 0x15f   : > { %v1958_v63 = vadd.f32 %v1957_v60, %v1956_v57  ;;  %v2006_v0 = vadd.f32 %v2005_v62, %v2004_v58  ;;  %v1959_v1 = vpop.f32.mrb[10].mxu0  ;;  %v2007_v2 = vpop.f32.mrb[10].mxu1  ;;  %v498_v57 = vld [vmem:[#allocation2 + $0xd0] sm:$0xff] }
 0x160   : > { %v1960_v4 = vpop.f32.mrb[11].mxu0  ;;  %v2008_v6 = vpop.f32.mrb[11].mxu1 }
 0x161   : > { %v989_v7 = vadd.f32 %v1958_v63, %v476_v59  ;;  %v1005_v8 = vadd.f32 %v2006_v0, %v492_v61  ;;  %v1961_v9 = vadd.f32 %v1960_v4, %v1959_v1  ;;  %v2009_v10 = vadd.f32 %v2008_v6, %v2007_v2  ;;  %v483_v63 = vld [vmem:[#allocation2 + $0x58] sm:$0xff] }
 0x162   : > { %v499_v1 = vld [vmem:[#allocation2 + $0xd8] sm:$0xff] }
 0x163   : > { %1021 = vst [vmem:[#allocation2 + $0x20] sm:$0xff] %v989_v7  ;;  %1037 = vst [vmem:[#allocation2 + $0xa0] sm:$0xff] %v1005_v8  ;;  %v990_v11 = vadd.f32 %v1961_v9, %v477_v3  ;;  %v1006_v12 = vadd.f32 %v2009_v10, %v493_v5 }
 0x165   : > { %1022 = vst [vmem:[#allocation2 + $0x28] sm:$0xff] %v990_v11  ;;  %1038 = vst [vmem:[#allocation2 + $0xa8] sm:$0xff] %v1006_v12  ;;  %v1962_v13 = vpop.f32.mrb[12].mxu0  ;;  %v2010_v14 = vpop.f32.mrb[12].mxu1  ;;  %v484_v11 = vld [vmem:[#allocation2 + $0x60] sm:$0xff] }
 0x166   : > { %v1963_v16 = vpop.f32.mrb[13].mxu0  ;;  %v2011_v18 = vpop.f32.mrb[13].mxu1 }
 0x167   : > { %v1964_v19 = vadd.f32 %v1963_v16, %v1962_v13  ;;  %v2012_v20 = vadd.f32 %v2011_v18, %v2010_v14  ;;  %v1965_v21 = vpop.f32.mrb[14].mxu0  ;;  %v2013_v22 = vpop.f32.mrb[14].mxu1  ;;  %v500_v13 = vld [vmem:[#allocation2 + $0xe0] sm:$0xff] }
 0x168   : > { %v1966_v24 = vpop.f32.mrb[15].mxu0  ;;  %v2014_v26 = vpop.f32.mrb[15].mxu1 }
 0x169   : > { %v991_v27 = vadd.f32 %v1964_v19, %v478_v15  ;;  %v1007_v28 = vadd.f32 %v2012_v20, %v494_v17  ;;  %v1967_v29 = vadd.f32 %v1966_v24, %v1965_v21  ;;  %v2015_v30 = vadd.f32 %v2014_v26, %v2013_v22  ;;  %v485_v19 = vld [vmem:[#allocation2 + $0x68] sm:$0xff] }
 0x16a   : > { %v501_v21 = vld [vmem:[#allocation2 + $0xe8] sm:$0xff] }
 0x16b   : > { %1023 = vst [vmem:[#allocation2 + $0x30] sm:$0xff] %v991_v27  ;;  %1039 = vst [vmem:[#allocation2 + $0xb0] sm:$0xff] %v1007_v28  ;;  %v992_v31 = vadd.f32 %v1967_v29, %v479_v23  ;;  %v1008_v32 = vadd.f32 %v2015_v30, %v495_v25 }
 0x16d   : > { %1024 = vst [vmem:[#allocation2 + $0x38] sm:$0xff] %v992_v31  ;;  %1040 = vst [vmem:[#allocation2 + $0xb8] sm:$0xff] %v1008_v32  ;;  %v1968_v33 = vpop.f32.mrb[16].mxu0  ;;  %v2016_v34 = vpop.f32.mrb[16].mxu1  ;;  %v486_v31 = vld [vmem:[#allocation2 + $0x70] sm:$0xff] }
 0x16e   : > { %v1969_v36 = vpop.f32.mrb[17].mxu0  ;;  %v2017_v38 = vpop.f32.mrb[17].mxu1 }
 0x16f   : > { %v1970_v39 = vadd.f32 %v1969_v36, %v1968_v33  ;;  %v2018_v40 = vadd.f32 %v2017_v38, %v2016_v34  ;;  %v1971_v41 = vpop.f32.mrb[18].mxu0  ;;  %v2019_v42 = vpop.f32.mrb[18].mxu1  ;;  %v502_v33 = vld [vmem:[#allocation2 + $0xf0] sm:$0xff] }
 0x170   : > { %v1972_v44 = vpop.f32.mrb[19].mxu0  ;;  %v2020_v46 = vpop.f32.mrb[19].mxu1 }
 0x171   : > { %v993_v47 = vadd.f32 %v1970_v39, %v480_v35  ;;  %v1009_v48 = vadd.f32 %v2018_v40, %v496_v37  ;;  %v1973_v49 = vadd.f32 %v1972_v44, %v1971_v41  ;;  %v2021_v50 = vadd.f32 %v2020_v46, %v2019_v42  ;;  %v487_v39 = vld [vmem:[#allocation2 + $0x78] sm:$0xff] }
 0x172   : > { %v503_v41 = vld [vmem:[#allocation2 + $0xf8] sm:$0xff] }
 0x173   : > { %1025 = vst [vmem:[#allocation2 + $0x40] sm:$0xff] %v993_v47  ;;  %1041 = vst [vmem:[#allocation2 + $0xc0] sm:$0xff] %v1009_v48  ;;  %v994_v51 = vadd.f32 %v1973_v49, %v481_v43  ;;  %v1010_v52 = vadd.f32 %v2021_v50, %v497_v45  ;;  %v1085_v49 = vld [vmem:[%s3018_s2] sm:$0xff] (!%p1760_p6)  ;;  %v1086_v50 = vld [vmem:[%s3018_s2 + $0x8] sm:$0xff] (!%p1760_p6) }
 0x175   : > { %1026 = vst [vmem:[#allocation2 + $0x48] sm:$0xff] %v994_v51  ;;  %1042 = vst [vmem:[#allocation2 + $0xc8] sm:$0xff] %v1010_v52  ;;  %v1974_v53 = vpop.f32.mrb[20].mxu0  ;;  %v2022_v54 = vpop.f32.mrb[20].mxu1  ;;  %v1087_v51 = vld [vmem:[%s3018_s2 + $0x10] sm:$0xff] (!%p1760_p6)  ;;  %v2168_v52 = vpack.c.bf16 (!%p1760_p6), %v1086_v50, %v1085_v49 }
 0x176   : > { %v1975_v56 = vpop.f32.mrb[21].mxu0  ;;  %v2023_v58 = vpop.f32.mrb[21].mxu1 }
 0x177   : > { %v1976_v59 = vadd.f32 %v1975_v56, %v1974_v53  ;;  %v2024_v60 = vadd.f32 %v2023_v58, %v2022_v54  ;;  %v1977_v61 = vpop.f32.mrb[22].mxu0  ;;  %v2025_v62 = vpop.f32.mrb[22].mxu1  ;;  %v1088_v53 = vld [vmem:[%s3018_s2 + $0x18] sm:$0xff] (!%p1760_p6)  ;;  %v1090_v56 = vld [vmem:[%s3018_s2 + $0x28] sm:$0xff] (!%p1760_p6)  ;;  %2169 = vmatprep.subr.bf16.mxu0 (!%p1760_p6), %v2168_v52  ;;  %2216 = vmatprep.subr.bf16.mxu1 (!%p1760_p6), %v2168_v52  ;;  %v1053_v58 = vld [vmem:[#allocation2] sm:$0xff] (!%p1760_p6) }
 0x178   : > { %v1978_v0 = vpop.f32.mrb[23].mxu0  ;;  %v2026_v2 = vpop.f32.mrb[23].mxu1  ;;  %v2172_v54 = vpack.c.bf16 (!%p1760_p6), %v1088_v53, %v1087_v51  ;;  %2171 = vmatpush3.bf16.msra.mxu0 (!%p1760_p6), %v2168_v52  ;;  %2224 = vmatpush3.bf16.msra.mxu1 (!%p1760_p6), %v2168_v52 }
 0x179   : > { %v995_v3 = vadd.f32 %v1976_v59, %v482_v55  ;;  %v1011_v4 = vadd.f32 %v2024_v60, %v498_v57  ;;  %v1979_v5 = vadd.f32 %v1978_v0, %v1977_v61  ;;  %v2027_v6 = vadd.f32 %v2026_v2, %v2025_v62  ;;  %v1089_v55 = vld [vmem:[%s3018_s2 + $0x20] sm:$0xff] (!%p1760_p6)  ;;  %v1091_v59 = vld [vmem:[%s3018_s2 + $0x30] sm:$0xff] (!%p1760_p6)  ;;  %v1092_v60 = vld [vmem:[%s3018_s2 + $0x38] sm:$0xff] (!%p1760_p6)  ;;  %2120 = vmatprep.mubr.f32.mxu0 (!%p1760_p6), %v1053_v58 }
 0x17a   : > { %2173 = vmatprep.subr.bf16.mxu0 (!%p1760_p6), %v2172_v54  ;;  %v2176_v57 = vpack.c.bf16 (!%p1760_p6), %v1090_v56, %v1089_v55  ;;  %2217 = vmatprep.subr.bf16.mxu1 (!%p1760_p6), %v2172_v54  ;;  %v2180_v61 = vpack.c.bf16 (!%p1760_p6), %v1092_v60, %v1091_v59  ;;  %v1093_v62 = vld [vmem:[%s3018_s2 + $0x40] sm:$0xff] (!%p1760_p6)  ;;  %v1095_v2 = vld [vmem:[%s3018_s2 + $0x50] sm:$0xff] (!%p1760_p6) }
 0x17b   : > { %1027 = vst [vmem:[#allocation2 + $0x50] sm:$0xff] %v995_v3  ;;  %1043 = vst [vmem:[#allocation2 + $0xd0] sm:$0xff] %v1011_v4  ;;  %v996_v7 = vadd.f32 %v1979_v5, %v483_v63  ;;  %v1012_v8 = vadd.f32 %v2027_v6, %v499_v1  ;;  %v1094_v63 = vld [vmem:[%s3018_s2 + $0x48] sm:$0xff] (!%p1760_p6)  ;;  %v1069_v0 = vld [vmem:[#allocation2 + $0x80] sm:$0xff] (!%p1760_p6) }
 0x17c   : > { %2175 = vmatpush3.bf16.msra.mxu0 (!%p1760_p6), %v2172_v54  ;;  %2225 = vmatpush3.bf16.msra.mxu1 (!%p1760_p6), %v2172_v54  ;;  %v2184_v1 = vpack.c.bf16 (!%p1760_p6), %v1094_v63, %v1093_v62  ;;  %v1096_v3 = vld [vmem:[%s3018_s2 + $0x58] sm:$0xff] (!%p1760_p6)  ;;  %v1097_v5 = vld [vmem:[%s3018_s2 + $0x60] sm:$0xff] (!%p1760_p6)  ;;  %v1098_v6 = vld [vmem:[%s3018_s2 + $0x68] sm:$0xff] (!%p1760_p6) }
 0x17d   : > { %1028 = vst [vmem:[#allocation2 + $0x58] sm:$0xff] %v996_v7  ;;  %1044 = vst [vmem:[#allocation2 + $0xd8] sm:$0xff] %v1012_v8  ;;  %v1980_v9 = vpop.f32.mrb[24].mxu0  ;;  %v2028_v10 = vpop.f32.mrb[24].mxu1  ;;  %2177 = vmatprep.subr.bf16.mxu0 (!%p1760_p6), %v2176_v57  ;;  %2218 = vmatprep.subr.bf16.mxu1 (!%p1760_p6), %v2176_v57  ;;  %v2188_v4 = vpack.c.bf16 (!%p1760_p6), %v1096_v3, %v1095_v2  ;;  %v2192_v7 = vpack.c.bf16 (!%p1760_p6), %v1098_v6, %v1097_v5  ;;  %v1099_v8 = vld [vmem:[%s3018_s2 + $0x70] sm:$0xff] (!%p1760_p6) }
 0x17e   : > { %v1981_v12 = vpop.f32.mrb[25].mxu0  ;;  %v2029_v14 = vpop.f32.mrb[25].mxu1  ;;  %2144 = vmatprep.mubr.f32.mxu1 (!%p1760_p6), %v1069_v0 }
 0x17f   : > { %v1982_v15 = vadd.f32 %v1981_v12, %v1980_v9  ;;  %v2030_v16 = vadd.f32 %v2029_v14, %v2028_v10  ;;  %v1983_v17 = vpop.f32.mrb[26].mxu0  ;;  %v2031_v18 = vpop.f32.mrb[26].mxu1  ;;  %v1100_v9 = vld [vmem:[%s3018_s2 + $0x78] sm:$0xff] (!%p1760_p6)  ;;  %v1070_v12 = vld [vmem:[#allocation2 + $0x88] sm:$0xff] (!%p1760_p6)  ;;  %v1071_v14 = vld [vmem:[#allocation2 + $0x90] sm:$0xff] (!%p1760_p6) }
 0x180   : > { %v1984_v20 = vpop.f32.mrb[27].mxu0  ;;  %v2032_v22 = vpop.f32.mrb[27].mxu1  ;;  %2179 = vmatpush3.bf16.msra.mxu0 (!%p1760_p6), %v2176_v57  ;;  %2226 = vmatpush3.bf16.msra.mxu1 (!%p1760_p6), %v2176_v57  ;;  %v2196_v10 = vpack.c.bf16 (!%p1760_p6), %v1100_v9, %v1099_v8 }
 0x181   : > { %v997_v23 = vadd.f32 %v1982_v15, %v484_v11  ;;  %v1013_v24 = vadd.f32 %v2030_v16, %v500_v13  ;;  %v1985_v25 = vadd.f32 %v1984_v20, %v1983_v17  ;;  %v2033_v26 = vadd.f32 %v2032_v22, %v2031_v18  ;;  %2181 = vmatprep.subr.bf16.mxu0 (!%p1760_p6), %v2180_v61  ;;  %v1054_v11 = vld [vmem:[#allocation2 + $0x8] sm:$0xff] (!%p1760_p6)  ;;  %v1055_v13 = vld [vmem:[#allocation2 + $0x10] sm:$0xff] (!%p1760_p6)  ;;  %v1056_v15 = vld [vmem:[#allocation2 + $0x18] sm:$0xff] (!%p1760_p6) }
 0x182   : > { %2219 = vmatprep.subr.bf16.mxu1 (!%p1760_p6), %v2180_v61  ;;  %v1072_v16 = vld [vmem:[#allocation2 + $0x98] sm:$0xff] (!%p1760_p6)  ;;  %v1057_v17 = vld [vmem:[#allocation2 + $0x20] sm:$0xff] (!%p1760_p6)  ;;  %v1074_v20 = vld [vmem:[#allocation2 + $0xa8] sm:$0xff] (!%p1760_p6) }
 0x183   : > { %1029 = vst [vmem:[#allocation2 + $0x60] sm:$0xff] %v997_v23  ;;  %1045 = vst [vmem:[#allocation2 + $0xe0] sm:$0xff] %v1013_v24  ;;  %v998_v27 = vadd.f32 %v1985_v25, %v485_v19  ;;  %v1014_v28 = vadd.f32 %v2033_v26, %v501_v21  ;;  %v1073_v18 = vld [vmem:[#allocation2 + $0xa0] sm:$0xff] (!%p1760_p6)  ;;  %v1058_v19 = vld [vmem:[#allocation2 + $0x28] sm:$0xff] (!%p1760_p6) }
 0x184   : > { %2183 = vmatpush3.bf16.msra.mxu0 (!%p1760_p6), %v2180_v61  ;;  %2227 = vmatpush3.bf16.msra.mxu1 (!%p1760_p6), %v2180_v61  ;;  %v1059_v21 = vld [vmem:[#allocation2 + $0x30] sm:$0xff] (!%p1760_p6)  ;;  %v1060_v23 = vld [vmem:[#allocation2 + $0x38] sm:$0xff] (!%p1760_p6)  ;;  %v1061_v25 = vld [vmem:[#allocation2 + $0x40] sm:$0xff] (!%p1760_p6) }
 0x185   : > { %1030 = vst [vmem:[#allocation2 + $0x68] sm:$0xff] %v998_v27  ;;  %1046 = vst [vmem:[#allocation2 + $0xe8] sm:$0xff] %v1014_v28  ;;  %v1986_v29 = vpop.f32.mrb[28].mxu0  ;;  %v2034_v30 = vpop.f32.mrb[28].mxu1  ;;  %2185 = vmatprep.subr.bf16.mxu0 (!%p1760_p6), %v2184_v1  ;;  %2220 = vmatprep.subr.bf16.mxu1 (!%p1760_p6), %v2184_v1  ;;  %v1075_v22 = vld [vmem:[#allocation2 + $0xb0] sm:$0xff] (!%p1760_p6)  ;;  %v1076_v24 = vld [vmem:[#allocation2 + $0xb8] sm:$0xff] (!%p1760_p6) }
 0x186   : > { %v1987_v32 = vpop.f32.mrb[29].mxu0  ;;  %v2035_v34 = vpop.f32.mrb[29].mxu1  ;;  %v1077_v26 = vld [vmem:[#allocation2 + $0xc0] sm:$0xff] (!%p1760_p6)  ;;  %v1062_v27 = vld [vmem:[#allocation2 + $0x48] sm:$0xff] (!%p1760_p6) }
 0x187   : > { %v1988_v35 = vadd.f32 %v1987_v32, %v1986_v29  ;;  %v2036_v36 = vadd.f32 %v2035_v34, %v2034_v30  ;;  %v1989_v37 = vpop.f32.mrb[30].mxu0  ;;  %v2037_v38 = vpop.f32.mrb[30].mxu1  ;;  %1052 = sbr.rel (%p1760_p6) target bundleno = 689 (0x2b1), region = 82  ;;  %v1078_v28 = vld [vmem:[#allocation2 + $0xc8] sm:$0xff] (!%p1760_p6)  ;;  %v1063_v29 = vld [vmem:[#allocation2 + $0x50] sm:$0xff] (!%p1760_p6)  ;;  %v1080_v32 = vld [vmem:[#allocation2 + $0xd8] sm:$0xff] (!%p1760_p6) }
 0x188   : > { %v1990_v40 = vpop.f32.mrb[31].mxu0  ;;  %v2038_v42 = vpop.f32.mrb[31].mxu1  ;;  %2187 = vmatpush3.bf16.msra.mxu0 (!%p1760_p6), %v2184_v1  ;;  %2228 = vmatpush3.bf16.msra.mxu1 (!%p1760_p6), %v2184_v1  ;;  %v1079_v30 = vld [vmem:[#allocation2 + $0xd0] sm:$0xff] (!%p1760_p6) }
 0x189   : > { %v999_v43 = vadd.f32 %v1988_v35, %v486_v31  ;;  %v1015_v44 = vadd.f32 %v2036_v36, %v502_v33  ;;  %v1991_v45 = vadd.f32 %v1990_v40, %v1989_v37  ;;  %v2039_v46 = vadd.f32 %v2038_v42, %v2037_v38  ;;  %2189 = vmatprep.subr.bf16.mxu0 (!%p1760_p6), %v2188_v4  ;;  %v1064_v31 = vld [vmem:[#allocation2 + $0x58] sm:$0xff] (!%p1760_p6) }
 0x18a   : > { %2221 = vmatprep.subr.bf16.mxu1 (!%p1760_p6), %v2188_v4  ;;  %v1065_v33 = vld [vmem:[#allocation2 + $0x60] sm:$0xff] (!%p1760_p6) }
 0x18b   : > { %1031 = vst [vmem:[#allocation2 + $0x70] sm:$0xff] %v999_v43  ;;  %1047 = vst [vmem:[#allocation2 + $0xf0] sm:$0xff] %v1015_v44  ;;  %v1000_v47 = vadd.f32 %v1991_v45, %v487_v39  ;;  %v1016_v48 = vadd.f32 %v2039_v46, %v503_v41  ;;  %v1081_v34 = vld [vmem:[#allocation2 + $0xe0] sm:$0xff] (!%p1760_p6) }
 0x18c   : > { %2191 = vmatpush3.bf16.msra.mxu0 (!%p1760_p6), %v2188_v4  ;;  %2229 = vmatpush3.bf16.msra.mxu1 (!%p1760_p6), %v2188_v4  ;;  %v1066_v35 = vld [vmem:[#allocation2 + $0x68] sm:$0xff] (!%p1760_p6)  ;;  %v2823_v41 = vld [vmem:[%s3019_s3] ss:$0 sm:$0xff] (!%p1760_p6) }
 0x18d   : > { %1032 = vst [vmem:[#allocation2 + $0x78] sm:$0xff] %v1000_v47  ;;  %1048 = vst [vmem:[#allocation2 + $0xf8] sm:$0xff] %v1016_v48  ;;  %2193 = vmatprep.subr.bf16.mxu0 (!%p1760_p6), %v2192_v7  ;;  %2222 = vmatprep.subr.bf16.mxu1 (!%p1760_p6), %v2192_v7  ;;  %v1082_v36 = vld [vmem:[#allocation2 + $0xe8] sm:$0xff] (!%p1760_p6) }
 0x190   : > { %2195 = vmatpush3.bf16.msra.mxu0 %v2192_v7  ;;  %2230 = vmatpush3.bf16.msra.mxu1 %v2192_v7 }
 0x191   : > { %2197 = vmatprep.subr.bf16.mxu0 %v2196_v10  ;;  %2223 = vmatprep.subr.bf16.mxu1 %v2196_v10 }
 0x192   : > { %v1067_v37 = vld [vmem:[#allocation2 + $0x70] sm:$0xff] }
 0x193   : > { %v1083_v38 = vld [vmem:[#allocation2 + $0xf0] sm:$0xff] }
 0x194   : > { %2199 = vmatpush3.bf16.msra.mxu0 %v2196_v10  ;;  %2231 = vmatpush3.bf16.msra.mxu1 %v2196_v10  ;;  %v1068_v39 = vld [vmem:[#allocation2 + $0x78] sm:$0xff] }
 0x195   : > { %v1084_v40 = vld [vmem:[#allocation2 + $0xf8] sm:$0xff] }
 0x197   : > { %2121 = vmatmul.mubr.f32.vlgmr.msra.gmra.mrb[0].mxu0 %v1054_v11  ;;  %2145 = vmatmul.mubr.f32.vlgmr.msra.gmra.mrb[0].mxu1 %v1070_v12 }
 0x198   : > { %2123 = vmatprep.mubr.f32.mxu0 %v1055_v13  ;;  %2147 = vmatprep.mubr.f32.mxu1 %v1071_v14 }
 0x19b   : > { %2124 = vmatmul.mubr.f32.gmra.mrb[2].mxu0 %v1056_v15  ;;  %2148 = vmatmul.mubr.f32.gmra.mrb[2].mxu1 %v1072_v16 }
 0x19c   : > { %2126 = vmatprep.mubr.f32.mxu0 %v1057_v17  ;;  %2150 = vmatprep.mubr.f32.mxu1 %v1073_v18 }
 0x19f   : > { %2127 = vmatmul.mubr.f32.gmra.mrb[4].mxu0 %v1058_v19  ;;  %2151 = vmatmul.mubr.f32.gmra.mrb[4].mxu1 %v1074_v20 }
 0x1a0   : > { %2129 = vmatprep.mubr.f32.mxu0 %v1059_v21  ;;  %2153 = vmatprep.mubr.f32.mxu1 %v1075_v22 }
 0x1a3   : > { %2130 = vmatmul.mubr.f32.gmra.mrb[6].mxu0 %v1060_v23  ;;  %2154 = vmatmul.mubr.f32.gmra.mrb[6].mxu1 %v1076_v24 }
 0x1a4   : > { %2132 = vmatprep.mubr.f32.mxu0 %v1061_v25  ;;  %2156 = vmatprep.mubr.f32.mxu1 %v1077_v26 }
 0x1a7   : > { %2133 = vmatmul.mubr.f32.gmra.mrb[8].mxu0 %v1062_v27  ;;  %2157 = vmatmul.mubr.f32.gmra.mrb[8].mxu1 %v1078_v28 }
 0x1a8   : > { %2135 = vmatprep.mubr.f32.mxu0 %v1063_v29  ;;  %2159 = vmatprep.mubr.f32.mxu1 %v1079_v30 }
 0x1ab   : > { %2136 = vmatmul.mubr.f32.gmra.mrb[10].mxu0 %v1064_v31  ;;  %2160 = vmatmul.mubr.f32.gmra.mrb[10].mxu1 %v1080_v32 }
 0x1ac   : > { %2138 = vmatprep.mubr.f32.mxu0 %v1065_v33  ;;  %2162 = vmatprep.mubr.f32.mxu1 %v1081_v34 }
 0x1af   : > { %2139 = vmatmul.mubr.f32.gmra.mrb[12].mxu0 %v1066_v35  ;;  %2163 = vmatmul.mubr.f32.gmra.mrb[12].mxu1 %v1082_v36 }
 0x1b0   : > { %2141 = vmatprep.mubr.f32.mxu0 %v1067_v37  ;;  %2165 = vmatprep.mubr.f32.mxu1 %v1083_v38 }
 0x1b3   : > { %2142 = vmatmul.mubr.f32.gmra.mrb[14].mxu0 %v1068_v39  ;;  %2166 = vmatmul.mubr.f32.gmra.mrb[14].mxu1 %v1084_v40 }
 0x26a   : > { %v2122_v42 = vpop.f32.mrb[0].mxu0  ;;  %v2146_v43 = vpop.f32.mrb[0].mxu1 }
 0x26b   : > { %v1180_v44 = vadd.f32 %v2122_v42, %v2823_v41  ;;  %v1174_v45 = vpop.f32.mrb[1].mxu0  ;;  %v2827_v46 = vadd.f32 %v2146_v43, %v2823_v41  ;;  %v1254_v47 = vpop.f32.mrb[1].mxu1 }
 0x26c   : > { %v1175_v48 = vadd.f32 %v2823_v41, %v1174_v45  ;;  %v2831_v49 = vadd.f32 %v2823_v41, %v1254_v47 }
 0x26d   : > { %v1334_v50 = vmax.f32 %v1180_v44, 0.0  ;;  %v1350_v51 = vmax.f32 %v2827_v46, 0.0 }
 0x26e   : > { %v1333_v52 = vmax.f32 %v1175_v48, 0.0  ;;  %v2125_v53 = vpop.f32.mrb[2].mxu0  ;;  %v1349_v54 = vmax.f32 %v2831_v49, 0.0  ;;  %v2149_v55 = vpop.f32.mrb[2].mxu1 }
 0x26f   : > { %v1190_v56 = vadd.f32 %v2125_v53, %v2823_v41  ;;  %v1184_v57 = vpop.f32.mrb[3].mxu0  ;;  %v2837_v58 = vadd.f32 %v2149_v55, %v2823_v41  ;;  %v1264_v59 = vpop.f32.mrb[3].mxu1 }
 0x270   : > { %v1836_v60 = vpack.c.bf16 %v1334_v50, %v1333_v52  ;;  %v1525_v61 = vadd.f32 %v1334_v50, %v1333_v52  ;;  %v1185_v62 = vadd.f32 %v2823_v41, %v1184_v57  ;;  %v1876_v63 = vpack.c.bf16 %v1350_v51, %v1349_v54 }
 0x271   : > { %v1336_v0 = vmax.f32 %v1190_v56, 0.0  ;;  %v1352_v1 = vmax.f32 %v2837_v58, 0.0  ;;  %v2846_v2 = vadd.f32 %v2823_v41, %v1264_v59 }
 0x272   : > { %1837 = vst [vmem:[%s2720_s17] sm:$0xff] %v1836_v60   ;;  %v1335_v3 = vmax.f32 %v1185_v62, 0.0  ;;  %v2128_v4 = vpop.f32.mrb[4].mxu0  ;;  %1920 = vst [vmem:[%s2720_s17 + $0x40] sm:$0xff] %v1876_v63   ;;  %v2152_v5 = vpop.f32.mrb[4].mxu1 }
 0x273   : > { %v1200_v6 = vadd.f32 %v2128_v4, %v2823_v41  ;;  %v1194_v7 = vpop.f32.mrb[5].mxu0  ;;  %v1351_v8 = vmax.f32 %v2846_v2, 0.0  ;;  %v2853_v9 = vadd.f32 %v2152_v5, %v2823_v41  ;;  %v1274_v10 = vpop.f32.mrb[5].mxu1 }
 0x274   : > { %v1841_v11 = vpack.c.bf16 %v1336_v0, %v1335_v3  ;;  %v1526_v12 = vadd.f32 %v1525_v61, %v1335_v3  ;;  %v1195_v13 = vadd.f32 %v2823_v41, %v1194_v7  ;;  %v2857_v14 = vadd.f32 %v2823_v41, %v1274_v10 }
 0x275   : > { %v1338_v15 = vmax.f32 %v1200_v6, 0.0  ;;  %v1881_v16 = vpack.c.bf16 %v1352_v1, %v1351_v8  ;;  %v1354_v17 = vmax.f32 %v2853_v9, 0.0 }
 0x276   : > { %1913 = vst [vmem:[%s2720_s17 + $0x8] sm:$0xff] %v1841_v11   ;;  %v1337_v18 = vmax.f32 %v1195_v13, 0.0  ;;  %v1527_v19 = vadd.f32 %v1526_v12, %v1336_v0  ;;  %v2131_v20 = vpop.f32.mrb[6].mxu0  ;;  %v1353_v21 = vmax.f32 %v2857_v14, 0.0  ;;  %v2155_v22 = vpop.f32.mrb[6].mxu1 }
 0x277   : > { %v1210_v23 = vadd.f32 %v2131_v20, %v2823_v41  ;;  %v1204_v24 = vpop.f32.mrb[7].mxu0  ;;  %1921 = vst [vmem:[%s2720_s17 + $0x48] sm:$0xff] %v1881_v16   ;;  %v2869_v25 = vadd.f32 %v2155_v22, %v2823_v41  ;;  %v1284_v26 = vpop.f32.mrb[7].mxu1 }
 0x278   : > { %v1846_v27 = vpack.c.bf16 %v1338_v15, %v1337_v18  ;;  %v1528_v28 = vadd.f32 %v1527_v19, %v1337_v18  ;;  %v1205_v29 = vadd.f32 %v2823_v41, %v1204_v24  ;;  %v1886_v30 = vpack.c.bf16 %v1354_v17, %v1353_v21 }
 0x279   : > { %v1340_v31 = vmax.f32 %v1210_v23, 0.0  ;;  %v1356_v32 = vmax.f32 %v2869_v25, 0.0  ;;  %v2878_v33 = vadd.f32 %v2823_v41, %v1284_v26 }
 0x27a   : > { %1914 = vst [vmem:[%s2720_s17 + $0x10] sm:$0xff] %v1846_v27   ;;  %v1339_v34 = vmax.f32 %v1205_v29, 0.0  ;;  %v1529_v35 = vadd.f32 %v1528_v28, %v1338_v15  ;;  %v2134_v36 = vpop.f32.mrb[8].mxu0  ;;  %1922 = vst [vmem:[%s2720_s17 + $0x50] sm:$0xff] %v1886_v30   ;;  %v2158_v37 = vpop.f32.mrb[8].mxu1 }
 0x27b   : > { %v1220_v38 = vadd.f32 %v2134_v36, %v2823_v41  ;;  %v1214_v39 = vpop.f32.mrb[9].mxu0  ;;  %v1355_v40 = vmax.f32 %v2878_v33, 0.0  ;;  %v2885_v42 = vadd.f32 %v2158_v37, %v2823_v41  ;;  %v1294_v43 = vpop.f32.mrb[9].mxu1 }
 0x27c   : > { %v1851_v44 = vpack.c.bf16 %v1340_v31, %v1339_v34  ;;  %v1530_v45 = vadd.f32 %v1529_v35, %v1339_v34  ;;  %v1215_v47 = vadd.f32 %v2823_v41, %v1214_v39  ;;  %v2889_v48 = vadd.f32 %v2823_v41, %v1294_v43 }
 0x27d   : > { %v1342_v50 = vmax.f32 %v1220_v38, 0.0  ;;  %v1891_v52 = vpack.c.bf16 %v1356_v32, %v1355_v40  ;;  %v1358_v53 = vmax.f32 %v2885_v42, 0.0 }
 0x27e   : > { %1915 = vst [vmem:[%s2720_s17 + $0x18] sm:$0xff] %v1851_v44   ;;  %v1341_v55 = vmax.f32 %v1215_v47, 0.0  ;;  %v1531_v56 = vadd.f32 %v1530_v45, %v1340_v31  ;;  %v2137_v57 = vpop.f32.mrb[10].mxu0  ;;  %v1357_v59 = vmax.f32 %v2889_v48, 0.0  ;;  %v2161_v60 = vpop.f32.mrb[10].mxu1 }
 0x27f   : > { %v1230_v61 = vadd.f32 %v2137_v57, %v2823_v41  ;;  %v1224_v62 = vpop.f32.mrb[11].mxu0  ;;  %1923 = vst [vmem:[%s2720_s17 + $0x58] sm:$0xff] %v1891_v52   ;;  %v2901_v63 = vadd.f32 %v2161_v60, %v2823_v41  ;;  %v1304_v0 = vpop.f32.mrb[11].mxu1 }
 0x280   : > { %v1856_v3 = vpack.c.bf16 %v1342_v50, %v1341_v55  ;;  %v1532_v4 = vadd.f32 %v1531_v56, %v1341_v55  ;;  %v1225_v5 = vadd.f32 %v2823_v41, %v1224_v62  ;;  %v1896_v6 = vpack.c.bf16 %v1358_v53, %v1357_v59 }
 0x281   : > { %v1344_v7 = vmax.f32 %v1230_v61, 0.0  ;;  %v1360_v10 = vmax.f32 %v2901_v63, 0.0  ;;  %v1305_v11 = vadd.f32 %v2823_v41, %v1304_v0 }
 0x282   : > { %1916 = vst [vmem:[%s2720_s17 + $0x20] sm:$0xff] %v1856_v3   ;;  %v1343_v12 = vmax.f32 %v1225_v5, 0.0  ;;  %v1533_v13 = vadd.f32 %v1532_v4, %v1342_v50  ;;  %v2140_v15 = vpop.f32.mrb[12].mxu0  ;;  %1924 = vst [vmem:[%s2720_s17 + $0x60] sm:$0xff] %v1896_v6   ;;  %v2164_v16 = vpop.f32.mrb[12].mxu1 }
 0x283   : > { %v1240_v18 = vadd.f32 %v2140_v15, %v2823_v41  ;;  %v1234_v19 = vpop.f32.mrb[13].mxu0  ;;  %v1359_v20 = vmax.f32 %v1305_v11, 0.0  ;;  %v1320_v22 = vadd.f32 %v2164_v16, %v2823_v41  ;;  %v1314_v23 = vpop.f32.mrb[13].mxu1 }
 0x284   : > { %v1861_v24 = vpack.c.bf16 %v1344_v7, %v1343_v12  ;;  %v1534_v26 = vadd.f32 %v1533_v13, %v1343_v12  ;;  %v1235_v27 = vadd.f32 %v2823_v41, %v1234_v19  ;;  %v1315_v28 = vadd.f32 %v2823_v41, %v1314_v23 }
 0x285   : > { %v1346_v29 = vmax.f32 %v1240_v18, 0.0  ;;  %v1901_v30 = vpack.c.bf16 %v1360_v10, %v1359_v20  ;;  %v1362_v31 = vmax.f32 %v1320_v22, 0.0 }
 0x286   : > { %1917 = vst [vmem:[%s2720_s17 + $0x28] sm:$0xff] %v1861_v24   ;;  %v1345_v34 = vmax.f32 %v1235_v27, 0.0  ;;  %v1535_v35 = vadd.f32 %v1534_v26, %v1344_v7  ;;  %v2143_v36 = vpop.f32.mrb[14].mxu0  ;;  %v1361_v37 = vmax.f32 %v1315_v28, 0.0  ;;  %v2167_v38 = vpop.f32.mrb[14].mxu1 }
 0x287   : > { %v1250_v39 = vadd.f32 %v2143_v36, %v2823_v41  ;;  %v1244_v43 = vpop.f32.mrb[15].mxu0  ;;  %1925 = vst [vmem:[%s2720_s17 + $0x68] sm:$0xff] %v1901_v30   ;;  %v1330_v44 = vadd.f32 %v2167_v38, %v2823_v41  ;;  %v1324_v45 = vpop.f32.mrb[15].mxu1 }
 0x288   : > { %v1866_v47 = vpack.c.bf16 %v1346_v29, %v1345_v34  ;;  %v1536_v50 = vadd.f32 %v1535_v35, %v1345_v34  ;;  %v1245_v52 = vadd.f32 %v2823_v41, %v1244_v43  ;;  %v1906_v55 = vpack.c.bf16 %v1362_v31, %v1361_v37 }
 0x289   : > { %v1348_v56 = vmax.f32 %v1250_v39, 0.0  ;;  %v1364_v57 = vmax.f32 %v1330_v44, 0.0  ;;  %v1325_v60 = vadd.f32 %v2823_v41, %v1324_v45 }
 0x28a   : > { %1918 = vst [vmem:[%s2720_s17 + $0x30] sm:$0xff] %v1866_v47   ;;  %v1347_v61 = vmax.f32 %v1245_v52, 0.0  ;;  %v1537_v62 = vadd.f32 %v1536_v50, %v1346_v29  ;;  %1926 = vst [vmem:[%s2720_s17 + $0x70] sm:$0xff] %v1906_v55  }
 0x28b   : > { %v1363_v63 = vmax.f32 %v1325_v60, 0.0 }
 0x28c   : > { %v1871_v0 = vpack.c.bf16 %v1348_v56, %v1347_v61  ;;  %v1538_v3 = vadd.f32 %v1537_v62, %v1347_v61 }
 0x28d   : > { %v1911_v4 = vpack.c.bf16 %v1364_v57, %v1363_v63 }
 0x28e   : > { %1919 = vst [vmem:[%s2720_s17 + $0x38] sm:$0xff] %v1871_v0   ;;  %v1539_v5 = vadd.f32 %v1538_v3, %v1348_v56 }
 0x28f   : > { %1927 = vst [vmem:[%s2720_s17 + $0x78] sm:$0xff] %v1911_v4  }
 0x290   : > { %v1540_v6 = vadd.f32 %v1539_v5, %v1349_v54 }
 0x292   : > { %v1541_v7 = vadd.f32 %v1540_v6, %v1350_v51 }
 0x294   : > { %v1542_v41 = vadd.f32 %v1541_v7, %v1351_v8 }
 0x296   : > { %v1543_v11 = vadd.f32 %v1542_v41, %v1352_v1 }
 0x298   : > { %v1544_v12 = vadd.f32 %v1543_v11, %v1353_v21 }
 0x29a   : > { %v1545_v13 = vadd.f32 %v1544_v12, %v1354_v17 }
 0x29c   : > { %v1546_v49 = vadd.f32 %v1545_v13, %v1355_v40 }
 0x29e   : > { %v1547_v46 = vadd.f32 %v1546_v49, %v1356_v32 }
 0x2a0   : > { %v1548_v51 = vadd.f32 %v1547_v46, %v1357_v59 }
 0x2a2   : > { %v1549_v54 = vadd.f32 %v1548_v51, %v1358_v53 }
 0x2a4   : > { %v1550_v58 = vadd.f32 %v1549_v54, %v1359_v20 }
 0x2a6   : > { %v1551_v1 = vadd.f32 %v1550_v58, %v1360_v10 }
 0x2a8   : > { %v1552_v2 = vadd.f32 %v1551_v1, %v1361_v37 }
 0x2aa   : > { %v1553_v8 = vadd.f32 %v1552_v2, %v1362_v31 }
 0x2ac   : > { %v1554_v14 = vadd.f32 %v1553_v8, %v1363_v63 }
 0x2ae   : > { %v1555_v21 = vadd.f32 %v1554_v14, %v1364_v57 }
 0x2b0   : > { %1556 = vst [vmem:[%s2711_s0] sm:$0xff] %v1555_v21 }
 0x2b1 PF: > { %s1832_s23 = sshll.u32 %s2484_s24, 11  ;;  %s1575_s6 = sshll.u32 %s2720_s17, 4  ;;  %s2954_s6 = int_to_ptr.vmem [resolvable:$true] %s1575_s6 }
 0x2b2   : > { %s2951_s21 = scalar_lea.hbm %s3020_s4, %s1832_s23  ;;  %s3034_s26 = sand.u32 1, %s2464_s19  }
 0x2b3   : > { %s2958_s30 = scalar_lea.sflag [#allocation5], %s3034_s26  ;;  %s2386_s0 = scalar_lea.vmem %s2954_s6, 2048 }
 0x2b4   : > { %p2387_p8 = scmp.ne.s32.totalorder %s2954_s6, %s2386_s0  ;;  %s2499_s24 = smov [#allocation4]  }
 0x2b5   : > { %s2390_s28 = sshll.u32 %s2499_s24, 4  ;;  %s2391_s28 = int_to_ptr.vmem [resolvable:$false] %s2390_s28 }
 0x2b6   : > { %p2388_p9 = pnand %p2387_p8, %p2604_p7  ;;  %s2392_s29 = scalar_lea.vmem %s2391_s28, 4096 }
 0x2b7   : > { %p2393_p11 = scmp.lt.s32.totalorder %s2954_s6, %s2391_s28  ;;  %p2394_p13 = scmp.lt.s32.totalorder %s2392_s29, %s2386_s0 }
 0x2b8   : > { %p2389_p10 = pneg %p2388_p9 }
 0x2b9   : > { %p2395_p0 = por %p2394_p13, %p2393_p11 }
 0x2bb   : > { %p2396_p1 = pnand %p2395_p0, %p2389_p10 }
 0x2bd   : > { %2399 = shalt.err (!%p2396_p1)
}
 0x2be   : > { %s2400_s17 = scalar_lea.hbm %s2951_s21, 2048  ;;  %s2404_s13 = scalar_lea.hbm %s3020_s4, 4096 }
 0x2bf   : > { %p2401_p2 = scmp.ne.s32.totalorder %s2951_s21, %s2400_s17  ;;  %p2405_p5 = scmp.lt.u32.totalorder %s2951_s21, %s3020_s4 }
 0x2c0   : > { %p2406_p6 = scmp.lt.u32.totalorder %s2404_s13, %s2400_s17  ;;  %p2408_p9 = scmp.lt.u32.totalorder %s2400_s17, %s2951_s21 }
 0x2c1   : > { %p2402_p3 = pnand %p2401_p2, %p2604_p7 }
 0x2c2   : > { %p2407_p8 = por %p2406_p6, %p2405_p5 }
 0x2c3   : > { %p2403_p4 = pneg %p2402_p3 }
 0x2c4   : > { %p2409_p10 = por %p2408_p9, %p2407_p8 }
 0x2c6   : > { %p2410_p11 = pnand %p2409_p10, %p2403_p4 }
 0x2c8   : > { %2413 = shalt.err (!%p2410_p11)
}
 0x2c9   : > { %s2500_s7 = smov 64   ;;  %s2501_s9 = smov 4  }
 0x2ca   : > { %2232 = dma.vmem_to_hbm [thread:$0]  (%p2604_p7), %s2954_s6, 2048, %s2951_s21, %s2958_s30, %s2500_s7, %s2500_s7, %s2501_s9  }
 0x2cb PF: > { %p2238_p13 = scmp.ge.s32.totalorder %s2496_s27, 2  ;;  %s1593_s26 = sand.u32 1, %s2460_s18  }
 0x2cc   : > { %s1594_s0 = scalar_lea.sflag [#allocation5], %s1593_s26 }
 0x2cd   : > { %p2235_p0 = pnand %p2238_p13, %p2612_p12 }
 0x2cf   : > { %2455 = dma.done.wait (!%p2235_p0), %s1594_s0, 2048  }
 0x2d0   : > { %2457 = vsyncadd (!%p2235_p0), %s1594_s0, 4294965248  ;;  %s19_s27 = sadd.s32 1, %s2496_s27   ;;  %s3035_s24 = sld [smem:[#allocation7_spill]] }
 0x2d1   : > { %p16_p1 = scmp.ge.s32.totalorder %s19_s27, 6   ;;  %s3036_s11 = sld [smem:[#allocation8_spill]] }
 0x2d2   : > { %s3037_s26 = sld [smem:[#allocation9_spill]]  ;;  %s3038_s18 = smov %s2464_s19 }
 0x2d3   : > { %s3039_s19 = smov %s2468_s20  ;;  %s3040_s20 = smov %s2617_s15 }
 0x2d4   : > { %s3041_s21 = smov %s2476_s22  ;;  %s3042_s22 = smov %s2620_s16 }
 0x2d5   : > { %s3043_s23 = smov %s2488_s25  ;;  %18 = sbr.rel (!%p16_p1) target bundleno = 8 (0x8), region = 137 }
 0x2d7   : > { %s3044_s25 = smov %s3036_s11 }
 0x2dc   :  { %1606 = vsyncpa [#allocation5], 1 }
 0x2dd   :  { %1608 = vsyncpa [#allocation5 + $0x1], 1 }

</bundles_post_ra>
